<compile_context>
chip_gen: v6e
topology: v6e:2x2x1
jax: 0.10.0
libtpu: 0.0.40
codegen_flags: <defaults>
</compile_context>

<pallas_src>
import functools

import jax
import jax.numpy as jnp
from jax.experimental import pallas as pl
from jax.experimental.pallas import tpu as pltpu

# ----------------------- small BERT config -----------------------
VOCAB = 100
HIDDEN = 32
HEADS = 4
HEAD_DIM = HIDDEN // HEADS
INTER = 64
LAYERS = 2
MAX_POS = 64
LN_EPS = 1e-12          # BERT LayerNorm eps
MASK_NEG = -1e9         # additive attention-mask bias for padded keys


# ----------------------- math helpers (usable inside + outside kernels) ---------------
def _erf(x):
    # Abramowitz & Stegun 7.1.26 (abs err ~1.5e-7), only exp/mul/add/where.
    a1, a2, a3, a4, a5 = 0.254829592, -0.284496736, 1.421413741, -1.453152027, 1.061405429
    p = 0.3275911
    z = jnp.abs(x)
    t = 1.0 / (1.0 + p * z)
    poly = ((((a5 * t + a4) * t + a3) * t + a2) * t + a1) * t
    y = 1.0 - poly * jnp.exp(-z * z)
    return jnp.where(x >= 0, y, -y)


def _gelu_exact(x):
    # HF "gelu" (erf-based, non-approximate)
    return 0.5 * x * (1.0 + _erf(x * 0.7071067811865476))


def _layernorm(x, g, b):
    mu = jnp.mean(x, axis=-1, keepdims=True)
    var = jnp.mean(jnp.square(x - mu), axis=-1, keepdims=True)
    return (x - mu) * jax.lax.rsqrt(var + LN_EPS) * g + b


# ----------------------- fused encoder kernel -----------------------
def _encoder_kernel(x_ref, mask_ref, eg_ref, eb_ref,
                    wqkv_ref, bqkv_ref, wo_ref, bo_ref,
                    ln1g_ref, ln1b_ref, w1_ref, b1_ref,
                    w2_ref, b2_ref, ln2g_ref, ln2b_ref,
                    out_ref, ctx_ref, *, num_layers, num_heads, seq_len):
    scale = 1.0 / (HEAD_DIM ** 0.5)

    x = x_ref[0].astype(jnp.float32)            # (S, H) embedding sums for this batch elem
    mask = mask_ref[0].astype(jnp.float32)      # (1, S)
    bias = (1.0 - mask) * MASK_NEG              # (1, S) additive key-mask bias

    # embedding LayerNorm
    x = _layernorm(x, eg_ref[...], eb_ref[...])

    for l in range(num_layers):                 # static unroll (LAYERS=2)
        # ---- fused QKV projection: one (S,H) x (H,3H) matmul ----
        qkv = jnp.dot(x, wqkv_ref[l], preferred_element_type=jnp.float32) + bqkv_ref[l]
        q = qkv[:, 0 * HIDDEN:1 * HIDDEN]
        k = qkv[:, 1 * HIDDEN:2 * HIDDEN]
        v = qkv[:, 2 * HIDDEN:3 * HIDDEN]

        # ---- per-head attention, all data VMEM-resident (no HBM relayouts) ----
        for h in range(num_heads):              # static unroll (HEADS=4)
            lo, hi = h * HEAD_DIM, (h + 1) * HEAD_DIM
            qh, kh, vh = q[:, lo:hi], k[:, lo:hi], v[:, lo:hi]
            # q @ k^T without materializing a transpose: contract dim 1 of both.
            s = jax.lax.dot_general(qh, kh, (((1,), (1,)), ((), ())),
                                    preferred_element_type=jnp.float32)
            s = s * scale + bias                                   # (S, S)
            m = jnp.max(s, axis=-1, keepdims=True)
            p = jnp.exp(s - m)
            p = p * pl.reciprocal(jnp.sum(p, axis=-1, keepdims=True), approx=True)
            ctx_ref[:, lo:hi] = jnp.dot(p, vh, preferred_element_type=jnp.float32)

        ctx = ctx_ref[...]                                          # (S, H)

        # ---- attention output projection + residual + LayerNorm (BertSelfOutput) ----
        attn = jnp.dot(ctx, wo_ref[l], preferred_element_type=jnp.float32) + bo_ref[l]
        x = _layernorm(attn + x, ln1g_ref[l], ln1b_ref[l])

        # ---- FFN (BertIntermediate exact-gelu + BertOutput) + residual + LayerNorm ----
        ff = _gelu_exact(jnp.dot(x, w1_ref[l], preferred_element_type=jnp.float32) + b1_ref[l])
        ffo = jnp.dot(ff, w2_ref[l], preferred_element_type=jnp.float32) + b2_ref[l]
        x = _layernorm(ffo + x, ln2g_ref[l], ln2b_ref[l])

    # ---- masked mean pooling on the MXU, divides folded into one reciprocal ----
    #   mean(h * mask, dim=1) / clamp(mask.sum(1), 1e-9)  ==  (mask @ h) / (S * clamp(sum,1e-9))
    num = jnp.dot(mask, x, preferred_element_type=jnp.float32)      # (1, H)
    denom = jnp.maximum(jnp.sum(mask), 1e-9)
    out_ref[0] = (num * (1.0 / (float(seq_len) * denom))).astype(out_ref.dtype)


def bert_encoder_fused(x_emb, mask, params):
    """x_emb: (B, S, H) f32 embedding sums, mask: (B, 1, S) f32 -> (B, H) f32."""
    B, S, H = x_emb.shape
    kernel = functools.partial(_encoder_kernel, num_layers=LAYERS,
                               num_heads=HEADS, seq_len=S)

    def full(arr):
        # Whole-array block whose block index never changes across the batch grid:
        # the weight is DMA'd into VMEM once and stays resident.
        return pl.BlockSpec(arr.shape, lambda b, _nd=arr.ndim: (0,) * _nd)

    weight_names = ["emb_ln_g", "emb_ln_b", "wqkv", "bqkv", "wo", "bo",
                    "ln1_g", "ln1_b", "w1", "b1", "w2", "b2", "ln2_g", "ln2_b"]
    weights = [params[n] for n in weight_names]

    out = pl.pallas_call(
        kernel,
        grid=(B,),
        out_shape=jax.ShapeDtypeStruct((B, 1, HIDDEN), jnp.float32),
        in_specs=[
            pl.BlockSpec((1, S, H), lambda b: (b, 0, 0)),
            pl.BlockSpec((1, 1, S), lambda b: (b, 0, 0)),
        ] + [full(w) for w in weights],
        out_specs=pl.BlockSpec((1, 1, HIDDEN), lambda b: (b, 0, 0)),
        scratch_shapes=[pltpu.VMEM((S, HIDDEN), jnp.float32)],
        compiler_params=pltpu.CompilerParams(dimension_semantics=("parallel",)),
    )(x_emb, mask, *weights)
    return out.reshape(B, HIDDEN)


# ----------------------- model glue (plain JAX) -----------------------
def init_params(key):
    ks = jax.random.split(key, 8)

    def dense(k, shape):
        return jax.random.normal(k, shape, jnp.float32) * 0.02

    return {
        "word_emb": dense(ks[0], (VOCAB, HIDDEN)),
        "pos_emb": dense(ks[1], (MAX_POS, HIDDEN)),
        "type_emb": dense(ks[2], (2, HIDDEN)),
        "emb_ln_g": jnp.ones((1, HIDDEN), jnp.float32),
        "emb_ln_b": jnp.zeros((1, HIDDEN), jnp.float32),
        # per-layer weights stacked on a leading LAYERS axis; Q/K/V fused into one matrix
        "wqkv": dense(ks[3], (LAYERS, HIDDEN, 3 * HIDDEN)),
        "bqkv": jnp.zeros((LAYERS, 1, 3 * HIDDEN), jnp.float32),
        "wo": dense(ks[4], (LAYERS, HIDDEN, HIDDEN)),
        "bo": jnp.zeros((LAYERS, 1, HIDDEN), jnp.float32),
        "ln1_g": jnp.ones((LAYERS, 1, HIDDEN), jnp.float32),
        "ln1_b": jnp.zeros((LAYERS, 1, HIDDEN), jnp.float32),
        "w1": dense(ks[5], (LAYERS, HIDDEN, INTER)),
        "b1": jnp.zeros((LAYERS, 1, INTER), jnp.float32),
        "w2": dense(ks[6], (LAYERS, INTER, HIDDEN)),
        "b2": jnp.zeros((LAYERS, 1, HIDDEN), jnp.float32),
        "ln2_g": jnp.ones((LAYERS, 1, HIDDEN), jnp.float32),
        "ln2_b": jnp.zeros((LAYERS, 1, HIDDEN), jnp.float32),
    }


def bert_encoder(params, input_ids, attention_mask):
    """input_ids: (B, S) int32, attention_mask: (B, S) int32 -> (B, HIDDEN) f32."""
    B, S = input_ids.shape
    # embeddings (gather stays in XLA glue; everything downstream is one Pallas kernel)
    we = params["word_emb"][input_ids]                 # (B, S, H)
    pe = params["pos_emb"][:S][None, :, :]             # (1, S, H)
    te = params["type_emb"][0][None, None, :]          # token_type_ids == 0
    x_emb = (we + pe + te).astype(jnp.float32)
    mask = attention_mask.astype(jnp.float32).reshape(B, 1, S)
    return bert_encoder_fused(x_emb, mask, params)


# ----------------------- pure-JAX reference (correctness check) -----------------------
def bert_encoder_ref(params, input_ids, attention_mask):
    B, S = input_ids.shape
    we = params["word_emb"][input_ids]
    pe = params["pos_emb"][:S][None]
    te = params["type_emb"][0][None, None]
    x = (we + pe + te).astype(jnp.float32)
    x = _layernorm(x, params["emb_ln_g"], params["emb_ln_b"])
    mask = attention_mask.astype(jnp.float32)
    bias = ((1.0 - mask) * MASK_NEG)[:, None, None, :]            # (B,1,1,S)
    for l in range(LAYERS):
        qkv = x @ params["wqkv"][l] + params["bqkv"][l]
        q, k, v = jnp.split(qkv, 3, axis=-1)

        def heads(t):
            return t.reshape(B, S, HEADS, HEAD_DIM).transpose(0, 2, 1, 3)

        qh, kh, vh = heads(q), heads(k), heads(v)
        s = jnp.einsum("bhqd,bhkd->bhqk", qh, kh) / (HEAD_DIM ** 0.5) + bias
        p = jax.nn.softmax(s, axis=-1)
        ctx = jnp.einsum("bhqk,bhkd->bhqd", p, vh).transpose(0, 2, 1, 3).reshape(B, S, HIDDEN)
        attn = ctx @ params["wo"][l] + params["bo"][l]
        x = _layernorm(attn + x, params["ln1_g"][l], params["ln1_b"][l])
        ff = _gelu_exact(x @ params["w1"][l] + params["b1"][l])
        ffo = ff @ params["w2"][l] + params["b2"][l]
        x = _layernorm(ffo + x, params["ln2_g"][l], params["ln2_b"][l])
    m = mask[:, :, None]
    num = jnp.sum(x * m, axis=1) / S
    denom = jnp.maximum(jnp.sum(m, axis=1), 1e-9)
    return num / denom


# ----------------------- demo -----------------------
if __name__ == "__main__":
    key = jax.random.PRNGKey(0)
    pkey, ikey = jax.random.split(key)
    params = init_params(pkey)

    B, S = 2, 8
    input_ids = jax.random.randint(ikey, (B, S), 0, VOCAB, dtype=jnp.int32)
    attention_mask = jnp.array(
        [[1, 1, 1, 1, 1, 1, 1, 1],
         [1, 1, 1, 1, 1, 0, 0, 0]], dtype=jnp.int32)

    out = bert_encoder(params, input_ids, attention_mask)
    out = jax.block_until_ready(out)
    assert out.shape == (B, HIDDEN) and out.dtype == jnp.float32
    assert bool(jnp.all(jnp.isfinite(out)))

    ref = bert_encoder_ref(params, input_ids, attention_mask)
    # tolerance covers EUP approx-reciprocal in the in-kernel softmax
    assert bool(jnp.allclose(out, ref, rtol=2e-2, atol=2e-3))

    print("KERNEL_OK")
</pallas_src>

<mosaic_0001>
module attributes {stable_mosaic.version = 11 : i64} {
  func.func @_encoder_kernel(%arg0: i32, %arg1: memref<1x8x32xf32, #tpu.memory_space<vmem>>, %arg2: memref<1x1x8xf32, #tpu.memory_space<vmem>>, %arg3: memref<1x32xf32, #tpu.memory_space<vmem>>, %arg4: memref<1x32xf32, #tpu.memory_space<vmem>>, %arg5: memref<2x32x96xf32, #tpu.memory_space<vmem>>, %arg6: memref<2x1x96xf32, #tpu.memory_space<vmem>>, %arg7: memref<2x32x32xf32, #tpu.memory_space<vmem>>, %arg8: memref<2x1x32xf32, #tpu.memory_space<vmem>>, %arg9: memref<2x1x32xf32, #tpu.memory_space<vmem>>, %arg10: memref<2x1x32xf32, #tpu.memory_space<vmem>>, %arg11: memref<2x32x64xf32, #tpu.memory_space<vmem>>, %arg12: memref<2x1x64xf32, #tpu.memory_space<vmem>>, %arg13: memref<2x64x32xf32, #tpu.memory_space<vmem>>, %arg14: memref<2x1x32xf32, #tpu.memory_space<vmem>>, %arg15: memref<2x1x32xf32, #tpu.memory_space<vmem>>, %arg16: memref<2x1x32xf32, #tpu.memory_space<vmem>>, %arg17: memref<1x1x32xf32, #tpu.memory_space<vmem>>, %arg18: memref<8x32xf32, #tpu.memory_space<vmem>>) attributes {dimension_semantics = [#tpu.dimension_semantics<parallel>], iteration_bounds = array<i64: 2>, scalar_prefetch = 0 : i64, scratch_operands = 1 : i64, tpu.core_type = #tpu.core_type<tc>, window_params = [{transform_indices = @transform_0, window_bounds = array<i64: 1, 8, 32>}, {transform_indices = @transform_1, window_bounds = array<i64: 1, 1, 8>}, {pipeline_mode = #tpu.pipeline_mode<synchronous>, transform_indices = @transform_2, window_bounds = array<i64: 1, 32>}, {pipeline_mode = #tpu.pipeline_mode<synchronous>, transform_indices = @transform_3, window_bounds = array<i64: 1, 32>}, {pipeline_mode = #tpu.pipeline_mode<synchronous>, transform_indices = @transform_4, window_bounds = array<i64: 2, 32, 96>}, {pipeline_mode = #tpu.pipeline_mode<synchronous>, transform_indices = @transform_5, window_bounds = array<i64: 2, 1, 96>}, {pipeline_mode = #tpu.pipeline_mode<synchronous>, transform_indices = @transform_6, window_bounds = array<i64: 2, 32, 32>}, {pipeline_mode = #tpu.pipeline_mode<synchronous>, transform_indices = @transform_7, window_bounds = array<i64: 2, 1, 32>}, {pipeline_mode = #tpu.pipeline_mode<synchronous>, transform_indices = @transform_8, window_bounds = array<i64: 2, 1, 32>}, {pipeline_mode = #tpu.pipeline_mode<synchronous>, transform_indices = @transform_9, window_bounds = array<i64: 2, 1, 32>}, {pipeline_mode = #tpu.pipeline_mode<synchronous>, transform_indices = @transform_10, window_bounds = array<i64: 2, 32, 64>}, {pipeline_mode = #tpu.pipeline_mode<synchronous>, transform_indices = @transform_11, window_bounds = array<i64: 2, 1, 64>}, {pipeline_mode = #tpu.pipeline_mode<synchronous>, transform_indices = @transform_12, window_bounds = array<i64: 2, 64, 32>}, {pipeline_mode = #tpu.pipeline_mode<synchronous>, transform_indices = @transform_13, window_bounds = array<i64: 2, 1, 32>}, {pipeline_mode = #tpu.pipeline_mode<synchronous>, transform_indices = @transform_14, window_bounds = array<i64: 2, 1, 32>}, {pipeline_mode = #tpu.pipeline_mode<synchronous>, transform_indices = @transform_15, window_bounds = array<i64: 2, 1, 32>}, {transform_indices = @transform_16, window_bounds = array<i64: 1, 1, 32>}]} {
    %c0 = arith.constant 0 : index
    %c0_0 = arith.constant 0 : index
    %c0_1 = arith.constant 0 : index
    %0 = vector.load %arg1[%c0, %c0_0, %c0_1] : memref<1x8x32xf32, #tpu.memory_space<vmem>>, vector<1x8x32xf32>
    %1 = vector.shape_cast %0 : vector<1x8x32xf32> to vector<8x32xf32>
    %c0_2 = arith.constant 0 : index
    %c0_3 = arith.constant 0 : index
    %c0_4 = arith.constant 0 : index
    %2 = vector.load %arg2[%c0_2, %c0_3, %c0_4] : memref<1x1x8xf32, #tpu.memory_space<vmem>>, vector<1x1x8xf32>
    %3 = vector.shape_cast %2 : vector<1x1x8xf32> to vector<1x8xf32>
    %cst = arith.constant 1.000000e+00 : f32
    %4 = vector.broadcast %cst : f32 to vector<1x8xf32>
    %5 = arith.subf %4, %3 : vector<1x8xf32>
    %cst_5 = arith.constant -1.000000e+09 : f32
    %6 = vector.broadcast %cst_5 : f32 to vector<1x8xf32>
    %7 = arith.mulf %5, %6 : vector<1x8xf32>
    %c0_6 = arith.constant 0 : index
    %c0_7 = arith.constant 0 : index
    %8 = vector.load %arg3[%c0_6, %c0_7] : memref<1x32xf32, #tpu.memory_space<vmem>>, vector<1x32xf32>
    %c0_8 = arith.constant 0 : index
    %c0_9 = arith.constant 0 : index
    %9 = vector.load %arg4[%c0_8, %c0_9] : memref<1x32xf32, #tpu.memory_space<vmem>>, vector<1x32xf32>
    %cst_10 = arith.constant dense<0.000000e+00> : vector<8xf32>
    %10 = vector.multi_reduction <add>, %1, %cst_10 [1] : vector<8x32xf32> to vector<8xf32>
    %11 = vector.shape_cast %10 : vector<8xf32> to vector<8x1xf32>
    %cst_11 = arith.constant 3.200000e+01 : f32
    %12 = vector.broadcast %cst_11 : f32 to vector<8x1xf32>
    %13 = arith.divf %11, %12 : vector<8x1xf32>
    %14 = vector.broadcast %13 : vector<8x1xf32> to vector<8x32xf32>
    %15 = arith.subf %1, %14 : vector<8x32xf32>
    %16 = arith.mulf %15, %15 : vector<8x32xf32>
    %cst_12 = arith.constant dense<0.000000e+00> : vector<8xf32>
    %17 = vector.multi_reduction <add>, %16, %cst_12 [1] : vector<8x32xf32> to vector<8xf32>
    %18 = vector.shape_cast %17 : vector<8xf32> to vector<8x1xf32>
    %cst_13 = arith.constant 3.200000e+01 : f32
    %19 = vector.broadcast %cst_13 : f32 to vector<8x1xf32>
    %20 = arith.divf %18, %19 : vector<8x1xf32>
    %21 = vector.broadcast %13 : vector<8x1xf32> to vector<8x32xf32>
    %22 = arith.subf %1, %21 : vector<8x32xf32>
    %cst_14 = arith.constant 9.99999996E-13 : f32
    %23 = vector.broadcast %cst_14 : f32 to vector<8x1xf32>
    %24 = arith.addf %20, %23 : vector<8x1xf32>
    %25 = math.rsqrt %24 : vector<8x1xf32>
    %26 = vector.broadcast %25 : vector<8x1xf32> to vector<8x32xf32>
    %27 = arith.mulf %22, %26 : vector<8x32xf32>
    %28 = vector.broadcast %8 : vector<1x32xf32> to vector<8x32xf32>
    %29 = arith.mulf %27, %28 : vector<8x32xf32>
    %30 = vector.broadcast %9 : vector<1x32xf32> to vector<8x32xf32>
    %31 = arith.addf %29, %30 : vector<8x32xf32>
    %c0_15 = arith.constant 0 : index
    %c0_16 = arith.constant 0 : index
    %c0_17 = arith.constant 0 : index
    %32 = vector.load %arg5[%c0_15, %c0_16, %c0_17] : memref<2x32x96xf32, #tpu.memory_space<vmem>>, vector<1x32x96xf32>
    %33 = vector.shape_cast %32 : vector<1x32x96xf32> to vector<32x96xf32>
    %cst_18 = arith.constant dense<0.000000e+00> : vector<8x96xf32>
    %34 = tpu.matmul %31, %33, %cst_18 {dimension_numbers = #tpu.dot_dimension_numbers<[1], [0], [0], [1], [0, 0, 1, 1], [], []>} : vector<8x32xf32>, vector<32x96xf32>, vector<8x96xf32> -> vector<8x96xf32>
    %c0_19 = arith.constant 0 : index
    %c0_20 = arith.constant 0 : index
    %c0_21 = arith.constant 0 : index
    %35 = vector.load %arg6[%c0_19, %c0_20, %c0_21] : memref<2x1x96xf32, #tpu.memory_space<vmem>>, vector<1x1x96xf32>
    %36 = vector.shape_cast %35 : vector<1x1x96xf32> to vector<1x96xf32>
    %37 = vector.broadcast %36 : vector<1x96xf32> to vector<8x96xf32>
    %38 = arith.addf %34, %37 : vector<8x96xf32>
    %39 = vector.extract_strided_slice %38 {offsets = [0, 0], sizes = [8, 32], strides = [1, 1]} : vector<8x96xf32> to vector<8x32xf32>
    %40 = vector.extract_strided_slice %38 {offsets = [0, 32], sizes = [8, 32], strides = [1, 1]} : vector<8x96xf32> to vector<8x32xf32>
    %41 = vector.extract_strided_slice %38 {offsets = [0, 64], sizes = [8, 32], strides = [1, 1]} : vector<8x96xf32> to vector<8x32xf32>
    %42 = vector.extract_strided_slice %39 {offsets = [0, 0], sizes = [8, 8], strides = [1, 1]} : vector<8x32xf32> to vector<8x8xf32>
    %43 = vector.extract_strided_slice %40 {offsets = [0, 0], sizes = [8, 8], strides = [1, 1]} : vector<8x32xf32> to vector<8x8xf32>
    %44 = vector.extract_strided_slice %41 {offsets = [0, 0], sizes = [8, 8], strides = [1, 1]} : vector<8x32xf32> to vector<8x8xf32>
    %cst_22 = arith.constant dense<0.000000e+00> : vector<8x8xf32>
    %45 = tpu.matmul %42, %43, %cst_22 {dimension_numbers = #tpu.dot_dimension_numbers<[1], [1], [0], [0], [0, 0, 1, 0], [], []>} : vector<8x8xf32>, vector<8x8xf32>, vector<8x8xf32> -> vector<8x8xf32>
    %cst_23 = arith.constant 0.353553385 : f32
    %46 = vector.broadcast %cst_23 : f32 to vector<8x8xf32>
    %47 = arith.mulf %45, %46 : vector<8x8xf32>
    %48 = vector.broadcast %7 : vector<1x8xf32> to vector<8x8xf32>
    %49 = arith.addf %47, %48 : vector<8x8xf32>
    %cst_24 = arith.constant dense<0xFF800000> : vector<8xf32>
    %50 = vector.multi_reduction <maximumf>, %49, %cst_24 [1] : vector<8x8xf32> to vector<8xf32>
    %51 = vector.shape_cast %50 : vector<8xf32> to vector<8x1xf32>
    %52 = vector.broadcast %51 : vector<8x1xf32> to vector<8x8xf32>
    %53 = arith.subf %49, %52 : vector<8x8xf32>
    %54 = math.exp %53 : vector<8x8xf32>
    %cst_25 = arith.constant dense<0.000000e+00> : vector<8xf32>
    %55 = vector.multi_reduction <add>, %54, %cst_25 [1] : vector<8x8xf32> to vector<8xf32>
    %56 = vector.shape_cast %55 : vector<8xf32> to vector<8x1xf32>
    %57 = tpu.reciprocal %56 {approx = true} : vector<8x1xf32> -> vector<8x1xf32>
    %58 = vector.broadcast %57 : vector<8x1xf32> to vector<8x8xf32>
    %59 = arith.mulf %54, %58 : vector<8x8xf32>
    %cst_26 = arith.constant dense<0.000000e+00> : vector<8x8xf32>
    %60 = tpu.matmul %59, %44, %cst_26 {dimension_numbers = #tpu.dot_dimension_numbers<[1], [0], [0], [1], [0, 0, 1, 1], [], []>} : vector<8x8xf32>, vector<8x8xf32>, vector<8x8xf32> -> vector<8x8xf32>
    %c0_27 = arith.constant 0 : index
    %c0_28 = arith.constant 0 : index
    %61 = vector.load %arg18[%c0_27, %c0_28] : memref<8x32xf32, #tpu.memory_space<vmem>>, vector<8x8xf32>
    tpu.vector_store %arg18[%c0_27, %c0_28], %60 {strides = array<i32>} : memref<8x32xf32, #tpu.memory_space<vmem>>, vector<8x8xf32>,
    %62 = vector.extract_strided_slice %39 {offsets = [0, 8], sizes = [8, 8], strides = [1, 1]} : vector<8x32xf32> to vector<8x8xf32>
    %63 = vector.extract_strided_slice %40 {offsets = [0, 8], sizes = [8, 8], strides = [1, 1]} : vector<8x32xf32> to vector<8x8xf32>
    %64 = vector.extract_strided_slice %41 {offsets = [0, 8], sizes = [8, 8], strides = [1, 1]} : vector<8x32xf32> to vector<8x8xf32>
    %cst_29 = arith.constant dense<0.000000e+00> : vector<8x8xf32>
    %65 = tpu.matmul %62, %63, %cst_29 {dimension_numbers = #tpu.dot_dimension_numbers<[1], [1], [0], [0], [0, 0, 1, 0], [], []>} : vector<8x8xf32>, vector<8x8xf32>, vector<8x8xf32> -> vector<8x8xf32>
    %cst_30 = arith.constant 0.353553385 : f32
    %66 = vector.broadcast %cst_30 : f32 to vector<8x8xf32>
    %67 = arith.mulf %65, %66 : vector<8x8xf32>
    %68 = vector.broadcast %7 : vector<1x8xf32> to vector<8x8xf32>
    %69 = arith.addf %67, %68 : vector<8x8xf32>
    %cst_31 = arith.constant dense<0xFF800000> : vector<8xf32>
    %70 = vector.multi_reduction <maximumf>, %69, %cst_31 [1] : vector<8x8xf32> to vector<8xf32>
    %71 = vector.shape_cast %70 : vector<8xf32> to vector<8x1xf32>
    %72 = vector.broadcast %71 : vector<8x1xf32> to vector<8x8xf32>
    %73 = arith.subf %69, %72 : vector<8x8xf32>
    %74 = math.exp %73 : vector<8x8xf32>
    %cst_32 = arith.constant dense<0.000000e+00> : vector<8xf32>
    %75 = vector.multi_reduction <add>, %74, %cst_32 [1] : vector<8x8xf32> to vector<8xf32>
    %76 = vector.shape_cast %75 : vector<8xf32> to vector<8x1xf32>
    %77 = tpu.reciprocal %76 {approx = true} : vector<8x1xf32> -> vector<8x1xf32>
    %78 = vector.broadcast %77 : vector<8x1xf32> to vector<8x8xf32>
    %79 = arith.mulf %74, %78 : vector<8x8xf32>
    %cst_33 = arith.constant dense<0.000000e+00> : vector<8x8xf32>
    %80 = tpu.matmul %79, %64, %cst_33 {dimension_numbers = #tpu.dot_dimension_numbers<[1], [0], [0], [1], [0, 0, 1, 1], [], []>} : vector<8x8xf32>, vector<8x8xf32>, vector<8x8xf32> -> vector<8x8xf32>
    %c0_34 = arith.constant 0 : index
    %c8 = arith.constant 8 : index
    %81 = vector.load %arg18[%c0_34, %c8] : memref<8x32xf32, #tpu.memory_space<vmem>>, vector<8x8xf32>
    tpu.vector_store %arg18[%c0_34, %c8], %80 {strides = array<i32>} : memref<8x32xf32, #tpu.memory_space<vmem>>, vector<8x8xf32>,
    %82 = vector.extract_strided_slice %39 {offsets = [0, 16], sizes = [8, 8], strides = [1, 1]} : vector<8x32xf32> to vector<8x8xf32>
    %83 = vector.extract_strided_slice %40 {offsets = [0, 16], sizes = [8, 8], strides = [1, 1]} : vector<8x32xf32> to vector<8x8xf32>
    %84 = vector.extract_strided_slice %41 {offsets = [0, 16], sizes = [8, 8], strides = [1, 1]} : vector<8x32xf32> to vector<8x8xf32>
    %cst_35 = arith.constant dense<0.000000e+00> : vector<8x8xf32>
    %85 = tpu.matmul %82, %83, %cst_35 {dimension_numbers = #tpu.dot_dimension_numbers<[1], [1], [0], [0], [0, 0, 1, 0], [], []>} : vector<8x8xf32>, vector<8x8xf32>, vector<8x8xf32> -> vector<8x8xf32>
    %cst_36 = arith.constant 0.353553385 : f32
    %86 = vector.broadcast %cst_36 : f32 to vector<8x8xf32>
    %87 = arith.mulf %85, %86 : vector<8x8xf32>
    %88 = vector.broadcast %7 : vector<1x8xf32> to vector<8x8xf32>
    %89 = arith.addf %87, %88 : vector<8x8xf32>
    %cst_37 = arith.constant dense<0xFF800000> : vector<8xf32>
    %90 = vector.multi_reduction <maximumf>, %89, %cst_37 [1] : vector<8x8xf32> to vector<8xf32>
    %91 = vector.shape_cast %90 : vector<8xf32> to vector<8x1xf32>
    %92 = vector.broadcast %91 : vector<8x1xf32> to vector<8x8xf32>
    %93 = arith.subf %89, %92 : vector<8x8xf32>
    %94 = math.exp %93 : vector<8x8xf32>
    %cst_38 = arith.constant dense<0.000000e+00> : vector<8xf32>
    %95 = vector.multi_reduction <add>, %94, %cst_38 [1] : vector<8x8xf32> to vector<8xf32>
    %96 = vector.shape_cast %95 : vector<8xf32> to vector<8x1xf32>
    %97 = tpu.reciprocal %96 {approx = true} : vector<8x1xf32> -> vector<8x1xf32>
    %98 = vector.broadcast %97 : vector<8x1xf32> to vector<8x8xf32>
    %99 = arith.mulf %94, %98 : vector<8x8xf32>
    %cst_39 = arith.constant dense<0.000000e+00> : vector<8x8xf32>
    %100 = tpu.matmul %99, %84, %cst_39 {dimension_numbers = #tpu.dot_dimension_numbers<[1], [0], [0], [1], [0, 0, 1, 1], [], []>} : vector<8x8xf32>, vector<8x8xf32>, vector<8x8xf32> -> vector<8x8xf32>
    %c0_40 = arith.constant 0 : index
    %c16 = arith.constant 16 : index
    %101 = vector.load %arg18[%c0_40, %c16] : memref<8x32xf32, #tpu.memory_space<vmem>>, vector<8x8xf32>
    tpu.vector_store %arg18[%c0_40, %c16], %100 {strides = array<i32>} : memref<8x32xf32, #tpu.memory_space<vmem>>, vector<8x8xf32>,
    %102 = vector.extract_strided_slice %39 {offsets = [0, 24], sizes = [8, 8], strides = [1, 1]} : vector<8x32xf32> to vector<8x8xf32>
    %103 = vector.extract_strided_slice %40 {offsets = [0, 24], sizes = [8, 8], strides = [1, 1]} : vector<8x32xf32> to vector<8x8xf32>
    %104 = vector.extract_strided_slice %41 {offsets = [0, 24], sizes = [8, 8], strides = [1, 1]} : vector<8x32xf32> to vector<8x8xf32>
    %cst_41 = arith.constant dense<0.000000e+00> : vector<8x8xf32>
    %105 = tpu.matmul %102, %103, %cst_41 {dimension_numbers = #tpu.dot_dimension_numbers<[1], [1], [0], [0], [0, 0, 1, 0], [], []>} : vector<8x8xf32>, vector<8x8xf32>, vector<8x8xf32> -> vector<8x8xf32>
    %cst_42 = arith.constant 0.353553385 : f32
    %106 = vector.broadcast %cst_42 : f32 to vector<8x8xf32>
    %107 = arith.mulf %105, %106 : vector<8x8xf32>
    %108 = vector.broadcast %7 : vector<1x8xf32> to vector<8x8xf32>
    %109 = arith.addf %107, %108 : vector<8x8xf32>
    %cst_43 = arith.constant dense<0xFF800000> : vector<8xf32>
    %110 = vector.multi_reduction <maximumf>, %109, %cst_43 [1] : vector<8x8xf32> to vector<8xf32>
    %111 = vector.shape_cast %110 : vector<8xf32> to vector<8x1xf32>
    %112 = vector.broadcast %111 : vector<8x1xf32> to vector<8x8xf32>
    %113 = arith.subf %109, %112 : vector<8x8xf32>
    %114 = math.exp %113 : vector<8x8xf32>
    %cst_44 = arith.constant dense<0.000000e+00> : vector<8xf32>
    %115 = vector.multi_reduction <add>, %114, %cst_44 [1] : vector<8x8xf32> to vector<8xf32>
    %116 = vector.shape_cast %115 : vector<8xf32> to vector<8x1xf32>
    %117 = tpu.reciprocal %116 {approx = true} : vector<8x1xf32> -> vector<8x1xf32>
    %118 = vector.broadcast %117 : vector<8x1xf32> to vector<8x8xf32>
    %119 = arith.mulf %114, %118 : vector<8x8xf32>
    %cst_45 = arith.constant dense<0.000000e+00> : vector<8x8xf32>
    %120 = tpu.matmul %119, %104, %cst_45 {dimension_numbers = #tpu.dot_dimension_numbers<[1], [0], [0], [1], [0, 0, 1, 1], [], []>} : vector<8x8xf32>, vector<8x8xf32>, vector<8x8xf32> -> vector<8x8xf32>
    %c0_46 = arith.constant 0 : index
    %c24 = arith.constant 24 : index
    %121 = vector.load %arg18[%c0_46, %c24] : memref<8x32xf32, #tpu.memory_space<vmem>>, vector<8x8xf32>
    tpu.vector_store %arg18[%c0_46, %c24], %120 {strides = array<i32>} : memref<8x32xf32, #tpu.memory_space<vmem>>, vector<8x8xf32>,
    %c0_47 = arith.constant 0 : index
    %c0_48 = arith.constant 0 : index
    %122 = vector.load %arg18[%c0_47, %c0_48] : memref<8x32xf32, #tpu.memory_space<vmem>>, vector<8x32xf32>
    %c0_49 = arith.constant 0 : index
    %c0_50 = arith.constant 0 : index
    %c0_51 = arith.constant 0 : index
    %123 = vector.load %arg7[%c0_49, %c0_50, %c0_51] : memref<2x32x32xf32, #tpu.memory_space<vmem>>, vector<1x32x32xf32>
    %124 = vector.shape_cast %123 : vector<1x32x32xf32> to vector<32x32xf32>
    %cst_52 = arith.constant dense<0.000000e+00> : vector<8x32xf32>
    %125 = tpu.matmul %122, %124, %cst_52 {dimension_numbers = #tpu.dot_dimension_numbers<[1], [0], [0], [1], [0, 0, 1, 1], [], []>} : vector<8x32xf32>, vector<32x32xf32>, vector<8x32xf32> -> vector<8x32xf32>
    %c0_53 = arith.constant 0 : index
    %c0_54 = arith.constant 0 : index
    %c0_55 = arith.constant 0 : index
    %126 = vector.load %arg8[%c0_53, %c0_54, %c0_55] : memref<2x1x32xf32, #tpu.memory_space<vmem>>, vector<1x1x32xf32>
    %127 = vector.shape_cast %126 : vector<1x1x32xf32> to vector<1x32xf32>
    %128 = vector.broadcast %127 : vector<1x32xf32> to vector<8x32xf32>
    %129 = arith.addf %125, %128 : vector<8x32xf32>
    %130 = arith.addf %129, %31 : vector<8x32xf32>
    %c0_56 = arith.constant 0 : index
    %c0_57 = arith.constant 0 : index
    %c0_58 = arith.constant 0 : index
    %131 = vector.load %arg9[%c0_56, %c0_57, %c0_58] : memref<2x1x32xf32, #tpu.memory_space<vmem>>, vector<1x1x32xf32>
    %132 = vector.shape_cast %131 : vector<1x1x32xf32> to vector<1x32xf32>
    %c0_59 = arith.constant 0 : index
    %c0_60 = arith.constant 0 : index
    %c0_61 = arith.constant 0 : index
    %133 = vector.load %arg10[%c0_59, %c0_60, %c0_61] : memref<2x1x32xf32, #tpu.memory_space<vmem>>, vector<1x1x32xf32>
    %134 = vector.shape_cast %133 : vector<1x1x32xf32> to vector<1x32xf32>
    %cst_62 = arith.constant dense<0.000000e+00> : vector<8xf32>
    %135 = vector.multi_reduction <add>, %130, %cst_62 [1] : vector<8x32xf32> to vector<8xf32>
    %136 = vector.shape_cast %135 : vector<8xf32> to vector<8x1xf32>
    %cst_63 = arith.constant 3.200000e+01 : f32
    %137 = vector.broadcast %cst_63 : f32 to vector<8x1xf32>
    %138 = arith.divf %136, %137 : vector<8x1xf32>
    %139 = vector.broadcast %138 : vector<8x1xf32> to vector<8x32xf32>
    %140 = arith.subf %130, %139 : vector<8x32xf32>
    %141 = arith.mulf %140, %140 : vector<8x32xf32>
    %cst_64 = arith.constant dense<0.000000e+00> : vector<8xf32>
    %142 = vector.multi_reduction <add>, %141, %cst_64 [1] : vector<8x32xf32> to vector<8xf32>
    %143 = vector.shape_cast %142 : vector<8xf32> to vector<8x1xf32>
    %cst_65 = arith.constant 3.200000e+01 : f32
    %144 = vector.broadcast %cst_65 : f32 to vector<8x1xf32>
    %145 = arith.divf %143, %144 : vector<8x1xf32>
    %146 = vector.broadcast %138 : vector<8x1xf32> to vector<8x32xf32>
    %147 = arith.subf %130, %146 : vector<8x32xf32>
    %cst_66 = arith.constant 9.99999996E-13 : f32
    %148 = vector.broadcast %cst_66 : f32 to vector<8x1xf32>
    %149 = arith.addf %145, %148 : vector<8x1xf32>
    %150 = math.rsqrt %149 : vector<8x1xf32>
    %151 = vector.broadcast %150 : vector<8x1xf32> to vector<8x32xf32>
    %152 = arith.mulf %147, %151 : vector<8x32xf32>
    %153 = vector.broadcast %132 : vector<1x32xf32> to vector<8x32xf32>
    %154 = arith.mulf %152, %153 : vector<8x32xf32>
    %155 = vector.broadcast %134 : vector<1x32xf32> to vector<8x32xf32>
    %156 = arith.addf %154, %155 : vector<8x32xf32>
    %c0_67 = arith.constant 0 : index
    %c0_68 = arith.constant 0 : index
    %c0_69 = arith.constant 0 : index
    %157 = vector.load %arg11[%c0_67, %c0_68, %c0_69] : memref<2x32x64xf32, #tpu.memory_space<vmem>>, vector<1x32x64xf32>
    %158 = vector.shape_cast %157 : vector<1x32x64xf32> to vector<32x64xf32>
    %cst_70 = arith.constant dense<0.000000e+00> : vector<8x64xf32>
    %159 = tpu.matmul %156, %158, %cst_70 {dimension_numbers = #tpu.dot_dimension_numbers<[1], [0], [0], [1], [0, 0, 1, 1], [], []>} : vector<8x32xf32>, vector<32x64xf32>, vector<8x64xf32> -> vector<8x64xf32>
    %c0_71 = arith.constant 0 : index
    %c0_72 = arith.constant 0 : index
    %c0_73 = arith.constant 0 : index
    %160 = vector.load %arg12[%c0_71, %c0_72, %c0_73] : memref<2x1x64xf32, #tpu.memory_space<vmem>>, vector<1x1x64xf32>
    %161 = vector.shape_cast %160 : vector<1x1x64xf32> to vector<1x64xf32>
    %162 = vector.broadcast %161 : vector<1x64xf32> to vector<8x64xf32>
    %163 = arith.addf %159, %162 : vector<8x64xf32>
    %cst_74 = arith.constant 5.000000e-01 : f32
    %164 = vector.broadcast %cst_74 : f32 to vector<8x64xf32>
    %165 = arith.mulf %164, %163 : vector<8x64xf32>
    %cst_75 = arith.constant 0.707106769 : f32
    %166 = vector.broadcast %cst_75 : f32 to vector<8x64xf32>
    %167 = arith.mulf %163, %166 : vector<8x64xf32>
    %168 = math.absf %167 : vector<8x64xf32>
    %cst_76 = arith.constant 0.327591091 : f32
    %169 = vector.broadcast %cst_76 : f32 to vector<8x64xf32>
    %170 = arith.mulf %169, %168 : vector<8x64xf32>
    %cst_77 = arith.constant 1.000000e+00 : f32
    %171 = vector.broadcast %cst_77 : f32 to vector<8x64xf32>
    %172 = arith.addf %171, %170 : vector<8x64xf32>
    %cst_78 = arith.constant 1.000000e+00 : f32
    %173 = vector.broadcast %cst_78 : f32 to vector<8x64xf32>
    %174 = arith.divf %173, %172 : vector<8x64xf32>
    %cst_79 = arith.constant 1.06140542 : f32
    %175 = vector.broadcast %cst_79 : f32 to vector<8x64xf32>
    %176 = arith.mulf %175, %174 : vector<8x64xf32>
    %cst_80 = arith.constant -1.45315206 : f32
    %177 = vector.broadcast %cst_80 : f32 to vector<8x64xf32>
    %178 = arith.addf %176, %177 : vector<8x64xf32>
    %179 = arith.mulf %178, %174 : vector<8x64xf32>
    %cst_81 = arith.constant 1.42141378 : f32
    %180 = vector.broadcast %cst_81 : f32 to vector<8x64xf32>
    %181 = arith.addf %179, %180 : vector<8x64xf32>
    %182 = arith.mulf %181, %174 : vector<8x64xf32>
    %cst_82 = arith.constant -0.284496725 : f32
    %183 = vector.broadcast %cst_82 : f32 to vector<8x64xf32>
    %184 = arith.addf %182, %183 : vector<8x64xf32>
    %185 = arith.mulf %184, %174 : vector<8x64xf32>
    %cst_83 = arith.constant 0.254829586 : f32
    %186 = vector.broadcast %cst_83 : f32 to vector<8x64xf32>
    %187 = arith.addf %185, %186 : vector<8x64xf32>
    %188 = arith.mulf %187, %174 : vector<8x64xf32>
    %cst_84 = arith.constant 0.000000e+00 : f32
    %189 = vector.broadcast %cst_84 : f32 to vector<8x64xf32>
    %190 = arith.subf %189, %168 : vector<8x64xf32>
    %191 = arith.mulf %190, %168 : vector<8x64xf32>
    %192 = math.exp %191 : vector<8x64xf32>
    %193 = arith.mulf %188, %192 : vector<8x64xf32>
    %cst_85 = arith.constant 1.000000e+00 : f32
    %194 = vector.broadcast %cst_85 : f32 to vector<8x64xf32>
    %195 = arith.subf %194, %193 : vector<8x64xf32>
    %cst_86 = arith.constant 0.000000e+00 : f32
    %196 = vector.broadcast %cst_86 : f32 to vector<8x64xf32>
    %197 = arith.cmpf oge, %167, %196 : vector<8x64xf32>
    %cst_87 = arith.constant 0.000000e+00 : f32
    %198 = vector.broadcast %cst_87 : f32 to vector<8x64xf32>
    %199 = arith.subf %198, %195 : vector<8x64xf32>
    %200 = arith.select %197, %195, %199 : vector<8x64xi1>, vector<8x64xf32>
    %cst_88 = arith.constant 1.000000e+00 : f32
    %201 = vector.broadcast %cst_88 : f32 to vector<8x64xf32>
    %202 = arith.addf %201, %200 : vector<8x64xf32>
    %203 = arith.mulf %165, %202 : vector<8x64xf32>
    %c0_89 = arith.constant 0 : index
    %c0_90 = arith.constant 0 : index
    %c0_91 = arith.constant 0 : index
    %204 = vector.load %arg13[%c0_89, %c0_90, %c0_91] : memref<2x64x32xf32, #tpu.memory_space<vmem>>, vector<1x64x32xf32>
    %205 = vector.shape_cast %204 : vector<1x64x32xf32> to vector<64x32xf32>
    %cst_92 = arith.constant dense<0.000000e+00> : vector<8x32xf32>
    %206 = tpu.matmul %203, %205, %cst_92 {dimension_numbers = #tpu.dot_dimension_numbers<[1], [0], [0], [1], [0, 0, 1, 1], [], []>} : vector<8x64xf32>, vector<64x32xf32>, vector<8x32xf32> -> vector<8x32xf32>
    %c0_93 = arith.constant 0 : index
    %c0_94 = arith.constant 0 : index
    %c0_95 = arith.constant 0 : index
    %207 = vector.load %arg14[%c0_93, %c0_94, %c0_95] : memref<2x1x32xf32, #tpu.memory_space<vmem>>, vector<1x1x32xf32>
    %208 = vector.shape_cast %207 : vector<1x1x32xf32> to vector<1x32xf32>
    %209 = vector.broadcast %208 : vector<1x32xf32> to vector<8x32xf32>
    %210 = arith.addf %206, %209 : vector<8x32xf32>
    %211 = arith.addf %210, %156 : vector<8x32xf32>
    %c0_96 = arith.constant 0 : index
    %c0_97 = arith.constant 0 : index
    %c0_98 = arith.constant 0 : index
    %212 = vector.load %arg15[%c0_96, %c0_97, %c0_98] : memref<2x1x32xf32, #tpu.memory_space<vmem>>, vector<1x1x32xf32>
    %213 = vector.shape_cast %212 : vector<1x1x32xf32> to vector<1x32xf32>
    %c0_99 = arith.constant 0 : index
    %c0_100 = arith.constant 0 : index
    %c0_101 = arith.constant 0 : index
    %214 = vector.load %arg16[%c0_99, %c0_100, %c0_101] : memref<2x1x32xf32, #tpu.memory_space<vmem>>, vector<1x1x32xf32>
    %215 = vector.shape_cast %214 : vector<1x1x32xf32> to vector<1x32xf32>
    %cst_102 = arith.constant dense<0.000000e+00> : vector<8xf32>
    %216 = vector.multi_reduction <add>, %211, %cst_102 [1] : vector<8x32xf32> to vector<8xf32>
    %217 = vector.shape_cast %216 : vector<8xf32> to vector<8x1xf32>
    %cst_103 = arith.constant 3.200000e+01 : f32
    %218 = vector.broadcast %cst_103 : f32 to vector<8x1xf32>
    %219 = arith.divf %217, %218 : vector<8x1xf32>
    %220 = vector.broadcast %219 : vector<8x1xf32> to vector<8x32xf32>
    %221 = arith.subf %211, %220 : vector<8x32xf32>
    %222 = arith.mulf %221, %221 : vector<8x32xf32>
    %cst_104 = arith.constant dense<0.000000e+00> : vector<8xf32>
    %223 = vector.multi_reduction <add>, %222, %cst_104 [1] : vector<8x32xf32> to vector<8xf32>
    %224 = vector.shape_cast %223 : vector<8xf32> to vector<8x1xf32>
    %cst_105 = arith.constant 3.200000e+01 : f32
    %225 = vector.broadcast %cst_105 : f32 to vector<8x1xf32>
    %226 = arith.divf %224, %225 : vector<8x1xf32>
    %227 = vector.broadcast %219 : vector<8x1xf32> to vector<8x32xf32>
    %228 = arith.subf %211, %227 : vector<8x32xf32>
    %cst_106 = arith.constant 9.99999996E-13 : f32
    %229 = vector.broadcast %cst_106 : f32 to vector<8x1xf32>
    %230 = arith.addf %226, %229 : vector<8x1xf32>
    %231 = math.rsqrt %230 : vector<8x1xf32>
    %232 = vector.broadcast %231 : vector<8x1xf32> to vector<8x32xf32>
    %233 = arith.mulf %228, %232 : vector<8x32xf32>
    %234 = vector.broadcast %213 : vector<1x32xf32> to vector<8x32xf32>
    %235 = arith.mulf %233, %234 : vector<8x32xf32>
    %236 = vector.broadcast %215 : vector<1x32xf32> to vector<8x32xf32>
    %237 = arith.addf %235, %236 : vector<8x32xf32>
    %c1 = arith.constant 1 : index
    %c0_107 = arith.constant 0 : index
    %c0_108 = arith.constant 0 : index
    %238 = vector.load %arg5[%c1, %c0_107, %c0_108] : memref<2x32x96xf32, #tpu.memory_space<vmem>>, vector<1x32x96xf32>
    %239 = vector.shape_cast %238 : vector<1x32x96xf32> to vector<32x96xf32>
    %cst_109 = arith.constant dense<0.000000e+00> : vector<8x96xf32>
    %240 = tpu.matmul %237, %239, %cst_109 {dimension_numbers = #tpu.dot_dimension_numbers<[1], [0], [0], [1], [0, 0, 1, 1], [], []>} : vector<8x32xf32>, vector<32x96xf32>, vector<8x96xf32> -> vector<8x96xf32>
    %c1_110 = arith.constant 1 : index
    %c0_111 = arith.constant 0 : index
    %c0_112 = arith.constant 0 : index
    %241 = vector.load %arg6[%c1_110, %c0_111, %c0_112] : memref<2x1x96xf32, #tpu.memory_space<vmem>>, vector<1x1x96xf32>
    %242 = vector.shape_cast %241 : vector<1x1x96xf32> to vector<1x96xf32>
    %243 = vector.broadcast %242 : vector<1x96xf32> to vector<8x96xf32>
    %244 = arith.addf %240, %243 : vector<8x96xf32>
    %245 = vector.extract_strided_slice %244 {offsets = [0, 0], sizes = [8, 32], strides = [1, 1]} : vector<8x96xf32> to vector<8x32xf32>
    %246 = vector.extract_strided_slice %244 {offsets = [0, 32], sizes = [8, 32], strides = [1, 1]} : vector<8x96xf32> to vector<8x32xf32>
    %247 = vector.extract_strided_slice %244 {offsets = [0, 64], sizes = [8, 32], strides = [1, 1]} : vector<8x96xf32> to vector<8x32xf32>
    %248 = vector.extract_strided_slice %245 {offsets = [0, 0], sizes = [8, 8], strides = [1, 1]} : vector<8x32xf32> to vector<8x8xf32>
    %249 = vector.extract_strided_slice %246 {offsets = [0, 0], sizes = [8, 8], strides = [1, 1]} : vector<8x32xf32> to vector<8x8xf32>
    %250 = vector.extract_strided_slice %247 {offsets = [0, 0], sizes = [8, 8], strides = [1, 1]} : vector<8x32xf32> to vector<8x8xf32>
    %cst_113 = arith.constant dense<0.000000e+00> : vector<8x8xf32>
    %251 = tpu.matmul %248, %249, %cst_113 {dimension_numbers = #tpu.dot_dimension_numbers<[1], [1], [0], [0], [0, 0, 1, 0], [], []>} : vector<8x8xf32>, vector<8x8xf32>, vector<8x8xf32> -> vector<8x8xf32>
    %cst_114 = arith.constant 0.353553385 : f32
    %252 = vector.broadcast %cst_114 : f32 to vector<8x8xf32>
    %253 = arith.mulf %251, %252 : vector<8x8xf32>
    %254 = vector.broadcast %7 : vector<1x8xf32> to vector<8x8xf32>
    %255 = arith.addf %253, %254 : vector<8x8xf32>
    %cst_115 = arith.constant dense<0xFF800000> : vector<8xf32>
    %256 = vector.multi_reduction <maximumf>, %255, %cst_115 [1] : vector<8x8xf32> to vector<8xf32>
    %257 = vector.shape_cast %256 : vector<8xf32> to vector<8x1xf32>
    %258 = vector.broadcast %257 : vector<8x1xf32> to vector<8x8xf32>
    %259 = arith.subf %255, %258 : vector<8x8xf32>
    %260 = math.exp %259 : vector<8x8xf32>
    %cst_116 = arith.constant dense<0.000000e+00> : vector<8xf32>
    %261 = vector.multi_reduction <add>, %260, %cst_116 [1] : vector<8x8xf32> to vector<8xf32>
    %262 = vector.shape_cast %261 : vector<8xf32> to vector<8x1xf32>
    %263 = tpu.reciprocal %262 {approx = true} : vector<8x1xf32> -> vector<8x1xf32>
    %264 = vector.broadcast %263 : vector<8x1xf32> to vector<8x8xf32>
    %265 = arith.mulf %260, %264 : vector<8x8xf32>
    %cst_117 = arith.constant dense<0.000000e+00> : vector<8x8xf32>
    %266 = tpu.matmul %265, %250, %cst_117 {dimension_numbers = #tpu.dot_dimension_numbers<[1], [0], [0], [1], [0, 0, 1, 1], [], []>} : vector<8x8xf32>, vector<8x8xf32>, vector<8x8xf32> -> vector<8x8xf32>
    %c0_118 = arith.constant 0 : index
    %c0_119 = arith.constant 0 : index
    %267 = vector.load %arg18[%c0_118, %c0_119] : memref<8x32xf32, #tpu.memory_space<vmem>>, vector<8x8xf32>
    tpu.vector_store %arg18[%c0_118, %c0_119], %266 {strides = array<i32>} : memref<8x32xf32, #tpu.memory_space<vmem>>, vector<8x8xf32>,
    %268 = vector.extract_strided_slice %245 {offsets = [0, 8], sizes = [8, 8], strides = [1, 1]} : vector<8x32xf32> to vector<8x8xf32>
    %269 = vector.extract_strided_slice %246 {offsets = [0, 8], sizes = [8, 8], strides = [1, 1]} : vector<8x32xf32> to vector<8x8xf32>
    %270 = vector.extract_strided_slice %247 {offsets = [0, 8], sizes = [8, 8], strides = [1, 1]} : vector<8x32xf32> to vector<8x8xf32>
    %cst_120 = arith.constant dense<0.000000e+00> : vector<8x8xf32>
    %271 = tpu.matmul %268, %269, %cst_120 {dimension_numbers = #tpu.dot_dimension_numbers<[1], [1], [0], [0], [0, 0, 1, 0], [], []>} : vector<8x8xf32>, vector<8x8xf32>, vector<8x8xf32> -> vector<8x8xf32>
    %cst_121 = arith.constant 0.353553385 : f32
    %272 = vector.broadcast %cst_121 : f32 to vector<8x8xf32>
    %273 = arith.mulf %271, %272 : vector<8x8xf32>
    %274 = vector.broadcast %7 : vector<1x8xf32> to vector<8x8xf32>
    %275 = arith.addf %273, %274 : vector<8x8xf32>
    %cst_122 = arith.constant dense<0xFF800000> : vector<8xf32>
    %276 = vector.multi_reduction <maximumf>, %275, %cst_122 [1] : vector<8x8xf32> to vector<8xf32>
    %277 = vector.shape_cast %276 : vector<8xf32> to vector<8x1xf32>
    %278 = vector.broadcast %277 : vector<8x1xf32> to vector<8x8xf32>
    %279 = arith.subf %275, %278 : vector<8x8xf32>
    %280 = math.exp %279 : vector<8x8xf32>
    %cst_123 = arith.constant dense<0.000000e+00> : vector<8xf32>
    %281 = vector.multi_reduction <add>, %280, %cst_123 [1] : vector<8x8xf32> to vector<8xf32>
    %282 = vector.shape_cast %281 : vector<8xf32> to vector<8x1xf32>
    %283 = tpu.reciprocal %282 {approx = true} : vector<8x1xf32> -> vector<8x1xf32>
    %284 = vector.broadcast %283 : vector<8x1xf32> to vector<8x8xf32>
    %285 = arith.mulf %280, %284 : vector<8x8xf32>
    %cst_124 = arith.constant dense<0.000000e+00> : vector<8x8xf32>
    %286 = tpu.matmul %285, %270, %cst_124 {dimension_numbers = #tpu.dot_dimension_numbers<[1], [0], [0], [1], [0, 0, 1, 1], [], []>} : vector<8x8xf32>, vector<8x8xf32>, vector<8x8xf32> -> vector<8x8xf32>
    %c0_125 = arith.constant 0 : index
    %c8_126 = arith.constant 8 : index
    %287 = vector.load %arg18[%c0_125, %c8_126] : memref<8x32xf32, #tpu.memory_space<vmem>>, vector<8x8xf32>
    tpu.vector_store %arg18[%c0_125, %c8_126], %286 {strides = array<i32>} : memref<8x32xf32, #tpu.memory_space<vmem>>, vector<8x8xf32>,
    %288 = vector.extract_strided_slice %245 {offsets = [0, 16], sizes = [8, 8], strides = [1, 1]} : vector<8x32xf32> to vector<8x8xf32>
    %289 = vector.extract_strided_slice %246 {offsets = [0, 16], sizes = [8, 8], strides = [1, 1]} : vector<8x32xf32> to vector<8x8xf32>
    %290 = vector.extract_strided_slice %247 {offsets = [0, 16], sizes = [8, 8], strides = [1, 1]} : vector<8x32xf32> to vector<8x8xf32>
    %cst_127 = arith.constant dense<0.000000e+00> : vector<8x8xf32>
    %291 = tpu.matmul %288, %289, %cst_127 {dimension_numbers = #tpu.dot_dimension_numbers<[1], [1], [0], [0], [0, 0, 1, 0], [], []>} : vector<8x8xf32>, vector<8x8xf32>, vector<8x8xf32> -> vector<8x8xf32>
    %cst_128 = arith.constant 0.353553385 : f32
    %292 = vector.broadcast %cst_128 : f32 to vector<8x8xf32>
    %293 = arith.mulf %291, %292 : vector<8x8xf32>
    %294 = vector.broadcast %7 : vector<1x8xf32> to vector<8x8xf32>
    %295 = arith.addf %293, %294 : vector<8x8xf32>
    %cst_129 = arith.constant dense<0xFF800000> : vector<8xf32>
    %296 = vector.multi_reduction <maximumf>, %295, %cst_129 [1] : vector<8x8xf32> to vector<8xf32>
    %297 = vector.shape_cast %296 : vector<8xf32> to vector<8x1xf32>
    %298 = vector.broadcast %297 : vector<8x1xf32> to vector<8x8xf32>
    %299 = arith.subf %295, %298 : vector<8x8xf32>
    %300 = math.exp %299 : vector<8x8xf32>
    %cst_130 = arith.constant dense<0.000000e+00> : vector<8xf32>
    %301 = vector.multi_reduction <add>, %300, %cst_130 [1] : vector<8x8xf32> to vector<8xf32>
    %302 = vector.shape_cast %301 : vector<8xf32> to vector<8x1xf32>
    %303 = tpu.reciprocal %302 {approx = true} : vector<8x1xf32> -> vector<8x1xf32>
    %304 = vector.broadcast %303 : vector<8x1xf32> to vector<8x8xf32>
    %305 = arith.mulf %300, %304 : vector<8x8xf32>
    %cst_131 = arith.constant dense<0.000000e+00> : vector<8x8xf32>
    %306 = tpu.matmul %305, %290, %cst_131 {dimension_numbers = #tpu.dot_dimension_numbers<[1], [0], [0], [1], [0, 0, 1, 1], [], []>} : vector<8x8xf32>, vector<8x8xf32>, vector<8x8xf32> -> vector<8x8xf32>
    %c0_132 = arith.constant 0 : index
    %c16_133 = arith.constant 16 : index
    %307 = vector.load %arg18[%c0_132, %c16_133] : memref<8x32xf32, #tpu.memory_space<vmem>>, vector<8x8xf32>
    tpu.vector_store %arg18[%c0_132, %c16_133], %306 {strides = array<i32>} : memref<8x32xf32, #tpu.memory_space<vmem>>, vector<8x8xf32>,
    %308 = vector.extract_strided_slice %245 {offsets = [0, 24], sizes = [8, 8], strides = [1, 1]} : vector<8x32xf32> to vector<8x8xf32>
    %309 = vector.extract_strided_slice %246 {offsets = [0, 24], sizes = [8, 8], strides = [1, 1]} : vector<8x32xf32> to vector<8x8xf32>
    %310 = vector.extract_strided_slice %247 {offsets = [0, 24], sizes = [8, 8], strides = [1, 1]} : vector<8x32xf32> to vector<8x8xf32>
    %cst_134 = arith.constant dense<0.000000e+00> : vector<8x8xf32>
    %311 = tpu.matmul %308, %309, %cst_134 {dimension_numbers = #tpu.dot_dimension_numbers<[1], [1], [0], [0], [0, 0, 1, 0], [], []>} : vector<8x8xf32>, vector<8x8xf32>, vector<8x8xf32> -> vector<8x8xf32>
    %cst_135 = arith.constant 0.353553385 : f32
    %312 = vector.broadcast %cst_135 : f32 to vector<8x8xf32>
    %313 = arith.mulf %311, %312 : vector<8x8xf32>
    %314 = vector.broadcast %7 : vector<1x8xf32> to vector<8x8xf32>
    %315 = arith.addf %313, %314 : vector<8x8xf32>
    %cst_136 = arith.constant dense<0xFF800000> : vector<8xf32>
    %316 = vector.multi_reduction <maximumf>, %315, %cst_136 [1] : vector<8x8xf32> to vector<8xf32>
    %317 = vector.shape_cast %316 : vector<8xf32> to vector<8x1xf32>
    %318 = vector.broadcast %317 : vector<8x1xf32> to vector<8x8xf32>
    %319 = arith.subf %315, %318 : vector<8x8xf32>
    %320 = math.exp %319 : vector<8x8xf32>
    %cst_137 = arith.constant dense<0.000000e+00> : vector<8xf32>
    %321 = vector.multi_reduction <add>, %320, %cst_137 [1] : vector<8x8xf32> to vector<8xf32>
    %322 = vector.shape_cast %321 : vector<8xf32> to vector<8x1xf32>
    %323 = tpu.reciprocal %322 {approx = true} : vector<8x1xf32> -> vector<8x1xf32>
    %324 = vector.broadcast %323 : vector<8x1xf32> to vector<8x8xf32>
    %325 = arith.mulf %320, %324 : vector<8x8xf32>
    %cst_138 = arith.constant dense<0.000000e+00> : vector<8x8xf32>
    %326 = tpu.matmul %325, %310, %cst_138 {dimension_numbers = #tpu.dot_dimension_numbers<[1], [0], [0], [1], [0, 0, 1, 1], [], []>} : vector<8x8xf32>, vector<8x8xf32>, vector<8x8xf32> -> vector<8x8xf32>
    %c0_139 = arith.constant 0 : index
    %c24_140 = arith.constant 24 : index
    %327 = vector.load %arg18[%c0_139, %c24_140] : memref<8x32xf32, #tpu.memory_space<vmem>>, vector<8x8xf32>
    tpu.vector_store %arg18[%c0_139, %c24_140], %326 {strides = array<i32>} : memref<8x32xf32, #tpu.memory_space<vmem>>, vector<8x8xf32>,
    %c0_141 = arith.constant 0 : index
    %c0_142 = arith.constant 0 : index
    %328 = vector.load %arg18[%c0_141, %c0_142] : memref<8x32xf32, #tpu.memory_space<vmem>>, vector<8x32xf32>
    %c1_143 = arith.constant 1 : index
    %c0_144 = arith.constant 0 : index
    %c0_145 = arith.constant 0 : index
    %329 = vector.load %arg7[%c1_143, %c0_144, %c0_145] : memref<2x32x32xf32, #tpu.memory_space<vmem>>, vector<1x32x32xf32>
    %330 = vector.shape_cast %329 : vector<1x32x32xf32> to vector<32x32xf32>
    %cst_146 = arith.constant dense<0.000000e+00> : vector<8x32xf32>
    %331 = tpu.matmul %328, %330, %cst_146 {dimension_numbers = #tpu.dot_dimension_numbers<[1], [0], [0], [1], [0, 0, 1, 1], [], []>} : vector<8x32xf32>, vector<32x32xf32>, vector<8x32xf32> -> vector<8x32xf32>
    %c1_147 = arith.constant 1 : index
    %c0_148 = arith.constant 0 : index
    %c0_149 = arith.constant 0 : index
    %332 = vector.load %arg8[%c1_147, %c0_148, %c0_149] : memref<2x1x32xf32, #tpu.memory_space<vmem>>, vector<1x1x32xf32>
    %333 = vector.shape_cast %332 : vector<1x1x32xf32> to vector<1x32xf32>
    %334 = vector.broadcast %333 : vector<1x32xf32> to vector<8x32xf32>
    %335 = arith.addf %331, %334 : vector<8x32xf32>
    %336 = arith.addf %335, %237 : vector<8x32xf32>
    %c1_150 = arith.constant 1 : index
    %c0_151 = arith.constant 0 : index
    %c0_152 = arith.constant 0 : index
    %337 = vector.load %arg9[%c1_150, %c0_151, %c0_152] : memref<2x1x32xf32, #tpu.memory_space<vmem>>, vector<1x1x32xf32>
    %338 = vector.shape_cast %337 : vector<1x1x32xf32> to vector<1x32xf32>
    %c1_153 = arith.constant 1 : index
    %c0_154 = arith.constant 0 : index
    %c0_155 = arith.constant 0 : index
    %339 = vector.load %arg10[%c1_153, %c0_154, %c0_155] : memref<2x1x32xf32, #tpu.memory_space<vmem>>, vector<1x1x32xf32>
    %340 = vector.shape_cast %339 : vector<1x1x32xf32> to vector<1x32xf32>
    %cst_156 = arith.constant dense<0.000000e+00> : vector<8xf32>
    %341 = vector.multi_reduction <add>, %336, %cst_156 [1] : vector<8x32xf32> to vector<8xf32>
    %342 = vector.shape_cast %341 : vector<8xf32> to vector<8x1xf32>
    %cst_157 = arith.constant 3.200000e+01 : f32
    %343 = vector.broadcast %cst_157 : f32 to vector<8x1xf32>
    %344 = arith.divf %342, %343 : vector<8x1xf32>
    %345 = vector.broadcast %344 : vector<8x1xf32> to vector<8x32xf32>
    %346 = arith.subf %336, %345 : vector<8x32xf32>
    %347 = arith.mulf %346, %346 : vector<8x32xf32>
    %cst_158 = arith.constant dense<0.000000e+00> : vector<8xf32>
    %348 = vector.multi_reduction <add>, %347, %cst_158 [1] : vector<8x32xf32> to vector<8xf32>
    %349 = vector.shape_cast %348 : vector<8xf32> to vector<8x1xf32>
    %cst_159 = arith.constant 3.200000e+01 : f32
    %350 = vector.broadcast %cst_159 : f32 to vector<8x1xf32>
    %351 = arith.divf %349, %350 : vector<8x1xf32>
    %352 = vector.broadcast %344 : vector<8x1xf32> to vector<8x32xf32>
    %353 = arith.subf %336, %352 : vector<8x32xf32>
    %cst_160 = arith.constant 9.99999996E-13 : f32
    %354 = vector.broadcast %cst_160 : f32 to vector<8x1xf32>
    %355 = arith.addf %351, %354 : vector<8x1xf32>
    %356 = math.rsqrt %355 : vector<8x1xf32>
    %357 = vector.broadcast %356 : vector<8x1xf32> to vector<8x32xf32>
    %358 = arith.mulf %353, %357 : vector<8x32xf32>
    %359 = vector.broadcast %338 : vector<1x32xf32> to vector<8x32xf32>
    %360 = arith.mulf %358, %359 : vector<8x32xf32>
    %361 = vector.broadcast %340 : vector<1x32xf32> to vector<8x32xf32>
    %362 = arith.addf %360, %361 : vector<8x32xf32>
    %c1_161 = arith.constant 1 : index
    %c0_162 = arith.constant 0 : index
    %c0_163 = arith.constant 0 : index
    %363 = vector.load %arg11[%c1_161, %c0_162, %c0_163] : memref<2x32x64xf32, #tpu.memory_space<vmem>>, vector<1x32x64xf32>
    %364 = vector.shape_cast %363 : vector<1x32x64xf32> to vector<32x64xf32>
    %cst_164 = arith.constant dense<0.000000e+00> : vector<8x64xf32>
    %365 = tpu.matmul %362, %364, %cst_164 {dimension_numbers = #tpu.dot_dimension_numbers<[1], [0], [0], [1], [0, 0, 1, 1], [], []>} : vector<8x32xf32>, vector<32x64xf32>, vector<8x64xf32> -> vector<8x64xf32>
    %c1_165 = arith.constant 1 : index
    %c0_166 = arith.constant 0 : index
    %c0_167 = arith.constant 0 : index
    %366 = vector.load %arg12[%c1_165, %c0_166, %c0_167] : memref<2x1x64xf32, #tpu.memory_space<vmem>>, vector<1x1x64xf32>
    %367 = vector.shape_cast %366 : vector<1x1x64xf32> to vector<1x64xf32>
    %368 = vector.broadcast %367 : vector<1x64xf32> to vector<8x64xf32>
    %369 = arith.addf %365, %368 : vector<8x64xf32>
    %cst_168 = arith.constant 5.000000e-01 : f32
    %370 = vector.broadcast %cst_168 : f32 to vector<8x64xf32>
    %371 = arith.mulf %370, %369 : vector<8x64xf32>
    %cst_169 = arith.constant 0.707106769 : f32
    %372 = vector.broadcast %cst_169 : f32 to vector<8x64xf32>
    %373 = arith.mulf %369, %372 : vector<8x64xf32>
    %374 = math.absf %373 : vector<8x64xf32>
    %cst_170 = arith.constant 0.327591091 : f32
    %375 = vector.broadcast %cst_170 : f32 to vector<8x64xf32>
    %376 = arith.mulf %375, %374 : vector<8x64xf32>
    %cst_171 = arith.constant 1.000000e+00 : f32
    %377 = vector.broadcast %cst_171 : f32 to vector<8x64xf32>
    %378 = arith.addf %377, %376 : vector<8x64xf32>
    %cst_172 = arith.constant 1.000000e+00 : f32
    %379 = vector.broadcast %cst_172 : f32 to vector<8x64xf32>
    %380 = arith.divf %379, %378 : vector<8x64xf32>
    %cst_173 = arith.constant 1.06140542 : f32
    %381 = vector.broadcast %cst_173 : f32 to vector<8x64xf32>
    %382 = arith.mulf %381, %380 : vector<8x64xf32>
    %cst_174 = arith.constant -1.45315206 : f32
    %383 = vector.broadcast %cst_174 : f32 to vector<8x64xf32>
    %384 = arith.addf %382, %383 : vector<8x64xf32>
    %385 = arith.mulf %384, %380 : vector<8x64xf32>
    %cst_175 = arith.constant 1.42141378 : f32
    %386 = vector.broadcast %cst_175 : f32 to vector<8x64xf32>
    %387 = arith.addf %385, %386 : vector<8x64xf32>
    %388 = arith.mulf %387, %380 : vector<8x64xf32>
    %cst_176 = arith.constant -0.284496725 : f32
    %389 = vector.broadcast %cst_176 : f32 to vector<8x64xf32>
    %390 = arith.addf %388, %389 : vector<8x64xf32>
    %391 = arith.mulf %390, %380 : vector<8x64xf32>
    %cst_177 = arith.constant 0.254829586 : f32
    %392 = vector.broadcast %cst_177 : f32 to vector<8x64xf32>
    %393 = arith.addf %391, %392 : vector<8x64xf32>
    %394 = arith.mulf %393, %380 : vector<8x64xf32>
    %cst_178 = arith.constant 0.000000e+00 : f32
    %395 = vector.broadcast %cst_178 : f32 to vector<8x64xf32>
    %396 = arith.subf %395, %374 : vector<8x64xf32>
    %397 = arith.mulf %396, %374 : vector<8x64xf32>
    %398 = math.exp %397 : vector<8x64xf32>
    %399 = arith.mulf %394, %398 : vector<8x64xf32>
    %cst_179 = arith.constant 1.000000e+00 : f32
    %400 = vector.broadcast %cst_179 : f32 to vector<8x64xf32>
    %401 = arith.subf %400, %399 : vector<8x64xf32>
    %cst_180 = arith.constant 0.000000e+00 : f32
    %402 = vector.broadcast %cst_180 : f32 to vector<8x64xf32>
    %403 = arith.cmpf oge, %373, %402 : vector<8x64xf32>
    %cst_181 = arith.constant 0.000000e+00 : f32
    %404 = vector.broadcast %cst_181 : f32 to vector<8x64xf32>
    %405 = arith.subf %404, %401 : vector<8x64xf32>
    %406 = arith.select %403, %401, %405 : vector<8x64xi1>, vector<8x64xf32>
    %cst_182 = arith.constant 1.000000e+00 : f32
    %407 = vector.broadcast %cst_182 : f32 to vector<8x64xf32>
    %408 = arith.addf %407, %406 : vector<8x64xf32>
    %409 = arith.mulf %371, %408 : vector<8x64xf32>
    %c1_183 = arith.constant 1 : index
    %c0_184 = arith.constant 0 : index
    %c0_185 = arith.constant 0 : index
    %410 = vector.load %arg13[%c1_183, %c0_184, %c0_185] : memref<2x64x32xf32, #tpu.memory_space<vmem>>, vector<1x64x32xf32>
    %411 = vector.shape_cast %410 : vector<1x64x32xf32> to vector<64x32xf32>
    %cst_186 = arith.constant dense<0.000000e+00> : vector<8x32xf32>
    %412 = tpu.matmul %409, %411, %cst_186 {dimension_numbers = #tpu.dot_dimension_numbers<[1], [0], [0], [1], [0, 0, 1, 1], [], []>} : vector<8x64xf32>, vector<64x32xf32>, vector<8x32xf32> -> vector<8x32xf32>
    %c1_187 = arith.constant 1 : index
    %c0_188 = arith.constant 0 : index
    %c0_189 = arith.constant 0 : index
    %413 = vector.load %arg14[%c1_187, %c0_188, %c0_189] : memref<2x1x32xf32, #tpu.memory_space<vmem>>, vector<1x1x32xf32>
    %414 = vector.shape_cast %413 : vector<1x1x32xf32> to vector<1x32xf32>
    %415 = vector.broadcast %414 : vector<1x32xf32> to vector<8x32xf32>
    %416 = arith.addf %412, %415 : vector<8x32xf32>
    %417 = arith.addf %416, %362 : vector<8x32xf32>
    %c1_190 = arith.constant 1 : index
    %c0_191 = arith.constant 0 : index
    %c0_192 = arith.constant 0 : index
    %418 = vector.load %arg15[%c1_190, %c0_191, %c0_192] : memref<2x1x32xf32, #tpu.memory_space<vmem>>, vector<1x1x32xf32>
    %419 = vector.shape_cast %418 : vector<1x1x32xf32> to vector<1x32xf32>
    %c1_193 = arith.constant 1 : index
    %c0_194 = arith.constant 0 : index
    %c0_195 = arith.constant 0 : index
    %420 = vector.load %arg16[%c1_193, %c0_194, %c0_195] : memref<2x1x32xf32, #tpu.memory_space<vmem>>, vector<1x1x32xf32>
    %421 = vector.shape_cast %420 : vector<1x1x32xf32> to vector<1x32xf32>
    %cst_196 = arith.constant dense<0.000000e+00> : vector<8xf32>
    %422 = vector.multi_reduction <add>, %417, %cst_196 [1] : vector<8x32xf32> to vector<8xf32>
    %423 = vector.shape_cast %422 : vector<8xf32> to vector<8x1xf32>
    %cst_197 = arith.constant 3.200000e+01 : f32
    %424 = vector.broadcast %cst_197 : f32 to vector<8x1xf32>
    %425 = arith.divf %423, %424 : vector<8x1xf32>
    %426 = vector.broadcast %425 : vector<8x1xf32> to vector<8x32xf32>
    %427 = arith.subf %417, %426 : vector<8x32xf32>
    %428 = arith.mulf %427, %427 : vector<8x32xf32>
    %cst_198 = arith.constant dense<0.000000e+00> : vector<8xf32>
    %429 = vector.multi_reduction <add>, %428, %cst_198 [1] : vector<8x32xf32> to vector<8xf32>
    %430 = vector.shape_cast %429 : vector<8xf32> to vector<8x1xf32>
    %cst_199 = arith.constant 3.200000e+01 : f32
    %431 = vector.broadcast %cst_199 : f32 to vector<8x1xf32>
    %432 = arith.divf %430, %431 : vector<8x1xf32>
    %433 = vector.broadcast %425 : vector<8x1xf32> to vector<8x32xf32>
    %434 = arith.subf %417, %433 : vector<8x32xf32>
    %cst_200 = arith.constant 9.99999996E-13 : f32
    %435 = vector.broadcast %cst_200 : f32 to vector<8x1xf32>
    %436 = arith.addf %432, %435 : vector<8x1xf32>
    %437 = math.rsqrt %436 : vector<8x1xf32>
    %438 = vector.broadcast %437 : vector<8x1xf32> to vector<8x32xf32>
    %439 = arith.mulf %434, %438 : vector<8x32xf32>
    %440 = vector.broadcast %419 : vector<1x32xf32> to vector<8x32xf32>
    %441 = arith.mulf %439, %440 : vector<8x32xf32>
    %442 = vector.broadcast %421 : vector<1x32xf32> to vector<8x32xf32>
    %443 = arith.addf %441, %442 : vector<8x32xf32>
    %cst_201 = arith.constant dense<0.000000e+00> : vector<1x32xf32>
    %444 = tpu.matmul %3, %443, %cst_201 {dimension_numbers = #tpu.dot_dimension_numbers<[1], [0], [0], [1], [0, 0, 1, 1], [], []>} : vector<1x8xf32>, vector<8x32xf32>, vector<1x32xf32> -> vector<1x32xf32>
    %445 = vector.shape_cast %3 : vector<1x8xf32> to vector<1x1x8xf32>
    %cst_202 = arith.constant dense<0.000000e+00> : vector<1xf32>
    %446 = vector.multi_reduction <add>, %445, %cst_202 [1, 2] : vector<1x1x8xf32> to vector<1xf32>
    %447 = vector.shape_cast %446 : vector<1xf32> to vector<1x1x1xf32>
    %448 = vector.extract %447[0, 0, 0] : f32 from vector<1x1x1xf32>
    %cst_203 = arith.constant 9.99999971E-10 : f32
    %449 = arith.maximumf %448, %cst_203 : f32
    %cst_204 = arith.constant 8.000000e+00 : f32
    %450 = arith.mulf %cst_204, %449 : f32
    %cst_205 = arith.constant 1.000000e+00 : f32
    %451 = arith.divf %cst_205, %450 : f32
    %452 = vector.broadcast %451 : f32 to vector<1x32xf32>
    %453 = arith.mulf %444, %452 : vector<1x32xf32>
    %c0_206 = arith.constant 0 : index
    %c0_207 = arith.constant 0 : index
    %c0_208 = arith.constant 0 : index
    %454 = vector.load %arg17[%c0_206, %c0_207, %c0_208] : memref<1x1x32xf32, #tpu.memory_space<vmem>>, vector<1x1x32xf32>
    %455 = vector.shape_cast %454 : vector<1x1x32xf32> to vector<1x32xf32>
    %456 = vector.shape_cast %453 : vector<1x32xf32> to vector<1x1x32xf32>
    tpu.vector_store %arg17[%c0_206, %c0_207, %c0_208], %456 {strides = array<i32>} : memref<1x1x32xf32, #tpu.memory_space<vmem>>, vector<1x1x32xf32>,
    return
  }
  func.func @transform_0(%arg0: i32) -> (i32, i32, i32) {
    %c0_i32 = arith.constant 0 : i32
    %c0_i32_0 = arith.constant 0 : i32
    %c0_i32_1 = arith.constant 0 : i32
    return %arg0, %c0_i32, %c0_i32_0 : i32, i32, i32
  }
  func.func @transform_1(%arg0: i32) -> (i32, i32, i32) {
    %c0_i32 = arith.constant 0 : i32
    %c0_i32_0 = arith.constant 0 : i32
    %c0_i32_1 = arith.constant 0 : i32
    return %arg0, %c0_i32, %c0_i32_0 : i32, i32, i32
  }
  func.func @transform_2(%arg0: i32) -> (i32, i32) {
    %c0_i32 = arith.constant 0 : i32
    %c0_i32_0 = arith.constant 0 : i32
    %c0_i32_1 = arith.constant 0 : i32
    return %c0_i32, %c0_i32_0 : i32, i32
  }
  func.func @transform_3(%arg0: i32) -> (i32, i32) {
    %c0_i32 = arith.constant 0 : i32
    %c0_i32_0 = arith.constant 0 : i32
    %c0_i32_1 = arith.constant 0 : i32
    return %c0_i32, %c0_i32_0 : i32, i32
  }
  func.func @transform_4(%arg0: i32) -> (i32, i32, i32) {
    %c0_i32 = arith.constant 0 : i32
    %c0_i32_0 = arith.constant 0 : i32
    %c0_i32_1 = arith.constant 0 : i32
    %c0_i32_2 = arith.constant 0 : i32
    return %c0_i32, %c0_i32_0, %c0_i32_1 : i32, i32, i32
  }
  func.func @transform_5(%arg0: i32) -> (i32, i32, i32) {
    %c0_i32 = arith.constant 0 : i32
    %c0_i32_0 = arith.constant 0 : i32
    %c0_i32_1 = arith.constant 0 : i32
    %c0_i32_2 = arith.constant 0 : i32
    return %c0_i32, %c0_i32_0, %c0_i32_1 : i32, i32, i32
  }
  func.func @transform_6(%arg0: i32) -> (i32, i32, i32) {
    %c0_i32 = arith.constant 0 : i32
    %c0_i32_0 = arith.constant 0 : i32
    %c0_i32_1 = arith.constant 0 : i32
    %c0_i32_2 = arith.constant 0 : i32
    return %c0_i32, %c0_i32_0, %c0_i32_1 : i32, i32, i32
  }
  func.func @transform_7(%arg0: i32) -> (i32, i32, i32) {
    %c0_i32 = arith.constant 0 : i32
    %c0_i32_0 = arith.constant 0 : i32
    %c0_i32_1 = arith.constant 0 : i32
    %c0_i32_2 = arith.constant 0 : i32
    return %c0_i32, %c0_i32_0, %c0_i32_1 : i32, i32, i32
  }
  func.func @transform_8(%arg0: i32) -> (i32, i32, i32) {
    %c0_i32 = arith.constant 0 : i32
    %c0_i32_0 = arith.constant 0 : i32
    %c0_i32_1 = arith.constant 0 : i32
    %c0_i32_2 = arith.constant 0 : i32
    return %c0_i32, %c0_i32_0, %c0_i32_1 : i32, i32, i32
  }
  func.func @transform_9(%arg0: i32) -> (i32, i32, i32) {
    %c0_i32 = arith.constant 0 : i32
    %c0_i32_0 = arith.constant 0 : i32
    %c0_i32_1 = arith.constant 0 : i32
    %c0_i32_2 = arith.constant 0 : i32
    return %c0_i32, %c0_i32_0, %c0_i32_1 : i32, i32, i32
  }
  func.func @transform_10(%arg0: i32) -> (i32, i32, i32) {
    %c0_i32 = arith.constant 0 : i32
    %c0_i32_0 = arith.constant 0 : i32
    %c0_i32_1 = arith.constant 0 : i32
    %c0_i32_2 = arith.constant 0 : i32
    return %c0_i32, %c0_i32_0, %c0_i32_1 : i32, i32, i32
  }
  func.func @transform_11(%arg0: i32) -> (i32, i32, i32) {
    %c0_i32 = arith.constant 0 : i32
    %c0_i32_0 = arith.constant 0 : i32
    %c0_i32_1 = arith.constant 0 : i32
    %c0_i32_2 = arith.constant 0 : i32
    return %c0_i32, %c0_i32_0, %c0_i32_1 : i32, i32, i32
  }
  func.func @transform_12(%arg0: i32) -> (i32, i32, i32) {
    %c0_i32 = arith.constant 0 : i32
    %c0_i32_0 = arith.constant 0 : i32
    %c0_i32_1 = arith.constant 0 : i32
    %c0_i32_2 = arith.constant 0 : i32
    return %c0_i32, %c0_i32_0, %c0_i32_1 : i32, i32, i32
  }
  func.func @transform_13(%arg0: i32) -> (i32, i32, i32) {
    %c0_i32 = arith.constant 0 : i32
    %c0_i32_0 = arith.constant 0 : i32
    %c0_i32_1 = arith.constant 0 : i32
    %c0_i32_2 = arith.constant 0 : i32
    return %c0_i32, %c0_i32_0, %c0_i32_1 : i32, i32, i32
  }
  func.func @transform_14(%arg0: i32) -> (i32, i32, i32) {
    %c0_i32 = arith.constant 0 : i32
    %c0_i32_0 = arith.constant 0 : i32
    %c0_i32_1 = arith.constant 0 : i32
    %c0_i32_2 = arith.constant 0 : i32
    return %c0_i32, %c0_i32_0, %c0_i32_1 : i32, i32, i32
  }
  func.func @transform_15(%arg0: i32) -> (i32, i32, i32) {
    %c0_i32 = arith.constant 0 : i32
    %c0_i32_0 = arith.constant 0 : i32
    %c0_i32_1 = arith.constant 0 : i32
    %c0_i32_2 = arith.constant 0 : i32
    return %c0_i32, %c0_i32_0, %c0_i32_1 : i32, i32, i32
  }
  func.func @transform_16(%arg0: i32) -> (i32, i32, i32) {
    %c0_i32 = arith.constant 0 : i32
    %c0_i32_0 = arith.constant 0 : i32
    %c0_i32_1 = arith.constant 0 : i32
    return %arg0, %c0_i32, %c0_i32_0 : i32, i32, i32
  }
}

</mosaic_0001>

<bundles_post_ra>
// kernel: tpu_custom_call.1
= control target key start
LH: loop header
LB: loop body
LE: loop exit
PB: predicated region body
PF: predicated region fallthrough
CT: control target
= control target key end

     0   :  { %s4538_s0 = inlined_call_operand.hbm [shape: f32[2,8,32], index: 0, kind: input, shape index: {}]   ;;  %s4539_s1 = inlined_call_operand.hbm [shape: f32[2,1,8], index: 1, kind: input, shape index: {}]   ;;  %s4540_s2 = inlined_call_operand.hbm [shape: f32[1,32], index: 2, kind: input, shape index: {}]   ;;  %s4541_s3 = inlined_call_operand.hbm [shape: f32[1,32], index: 3, kind: input, shape index: {}]   ;;  %s4542_s4 = inlined_call_operand.vmem [shape: f32[2,32,96], index: 4, kind: input, shape index: {}]   ;;  %s4543_s5 = inlined_call_operand.vmem [shape: f32[2,1,96], index: 5, kind: input, shape index: {}]   ;;  %s4544_s6 = inlined_call_operand.vmem [shape: f32[2,32,32], index: 6, kind: input, shape index: {}]   ;;  %s4545_s7 = inlined_call_operand.vmem [shape: f32[2,1,32], index: 7, kind: input, shape index: {}]   ;;  %s4546_s8 = inlined_call_operand.vmem [shape: f32[2,1,32], index: 8, kind: input, shape index: {}]   ;;  %s4547_s9 = inlined_call_operand.vmem [shape: f32[2,1,32], index: 9, kind: input, shape index: {}]   ;;  %s4548_s10 = inlined_call_operand.vmem [shape: f32[2,32,64], index: 10, kind: input, shape index: {}]   ;;  %s4549_s11 = inlined_call_operand.vmem [shape: f32[2,1,64], index: 11, kind: input, shape index: {}]   ;;  %s4550_s12 = inlined_call_operand.vmem [shape: f32[2,64,32], index: 12, kind: input, shape index: {}]   ;;  %s4551_s13 = inlined_call_operand.vmem [shape: f32[2,1,32], index: 13, kind: input, shape index: {}]   ;;  %s4552_s14 = inlined_call_operand.vmem [shape: f32[2,1,32], index: 14, kind: input, shape index: {}]   ;;  %s4553_s15 = inlined_call_operand.vmem [shape: f32[2,1,32], index: 15, kind: input, shape index: {}]   ;;  %s4554_s16 = inlined_call_operand.hbm [shape: f32[2,1,32], index: 16, kind: output, shape index: {}]  }
   0x1   :  { %4579 = sst [smem:[#allocation23_spill]] %s4538_s0 }
   0x2   :  { %4580 = sst [smem:[#allocation24_spill]] %s4540_s2 }
   0x3   :  { %4581 = sst [smem:[#allocation25_spill]] %s4541_s3 }
   0x4   :  { %4582 = sst [smem:[#allocation26_spill]] %s4551_s13 }
   0x5   :  { %4583 = sst [smem:[#allocation27_spill]] %s4552_s14 }
   0x6   :  { %4584 = sst [smem:[#allocation28_spill]] %s4553_s15 }
   0x7   :  { %4585 = sst [smem:[#allocation29_spill]] %s4554_s16 }
   0x8   :  { %21 = vsyncpa [#allocation4], 0 }
   0x9   :  { %23 = vsyncpa [#allocation4 + $0x1], 0 }
   0xa   :  { %24 = vsyncpa [#allocation7], 0 }
   0xb   :  { %26 = vsyncpa [#allocation7 + $0x1], 0 }
   0xc   :  { %27 = vsyncpa [#allocation10], 0 }
   0xd   :  { %28 = vsyncpa [#allocation5], 0 }
   0xe   :  { %30 = vsyncpa [#allocation5 + $0x1], 0  ;;  %s3890_s21 = smov 0   ;;  %s3892_s22 = smov 0  }
   0xf   :  { %s3894_s23 = smov 0   ;;  %s3896_s24 = smov 0  }
  0x10 LB: > { %4586 = sst [smem:[#allocation17_spill]] %s3769_s21  ;;  %s3911_s25 = sadd.s32 4294967295, %s3781_s24   ;;  %s3781_s24 = sphi %s3896_s24, %s4626_s24   ;;  %s3777_s23 = sphi %s3894_s23, %s4628_s23   ;;  %s3773_s22 = sphi %s3892_s22, %s4630_s22   ;;  %s3769_s21 = sphi %s3890_s21, %s4629_s21  }
  0x11   : > { %4587 = sst [smem:[#allocation18_spill]] %s3777_s23  ;;  %s3086_s26 = sadd.s32 4294967294, %s3781_s24  }
  0x12   : > { %p56_p0 = scmp.ne.s32.totalorder %s3773_s22, %s3769_s21  ;;  %p4560_p1 = scmp.eq.s32.totalorder %s3911_s25, 0 }
  0x13   : > { %p406_p3 = scmp.eq.s32.totalorder %s3086_s26, 1  ;;  %p3087_p5 = scmp.ge.s32.totalorder %s3781_s24, 1 }
  0x14   : > { %p3920_p4 = por %p4560_p1, %p56_p0  ;;  %p413_p7 = scmp.lt.s32.totalorder %s3781_s24, 3 }
  0x15   : > { %p3925_p6 = por %p406_p3, %p56_p0  ;;  %s3783_s30 = smov [#allocation8]  }
  0x16   : > { %s4588_s27 = scalar_select %p3920_p4, 1, 0 }
  0x17   : > { %s4589_s28 = scalar_select %p3925_p6, 1, 0 }
  0x18   : > { %p3930_p8 = pnand %p3087_p5, %p413_p7  ;;  %s426_s0 = sshll.u32 %s3783_s30, 4  ;;  %s427_s0 = int_to_ptr.vmem [resolvable:$true] %s426_s0 }
  0x19   : > { %4590 = sst [smem:[#allocation19_spill]] %s4589_s28  ;;  %s3784_s17 = smov [#allocation9]  }
  0x1a   : > { %s4591_s29 = scalar_select %p3930_p8, 1, 0 }
  0x1b   : > { %p3469_p10 = pneg %p3930_p8  ;;  %s437_s18 = sshll.u32 %s3784_s17, 4  ;;  %s438_s18 = int_to_ptr.vmem [resolvable:$true] %s437_s18 }
  0x1c   : > { %s3944_s20 = sadd.s32 1, %s3781_s24   ;;  %s3608_s30 = scalar_lea.vmem %s427_s0, 16 }
  0x1d   : > { %p3939_p11 = pnand %p3469_p10, %p4560_p1  ;;  %4593 = sst [smem:[#allocation20_spill]] %s3944_s20 }
  0x1e   : > { %s40_s26 = ssub.s32 %s3781_s24, %s3944_s20  ;;  %p3609_p13 = scmp.ne.s32.totalorder %s427_s0, %s3608_s30 }
  0x1f   : > { %p3599_p12 = pneg %p3939_p11  ;;  %s3615_s17 = scalar_lea.vmem %s427_s0, 32 }
  0x20   : > { %p3616_p5 = scmp.lt.s32.totalorder %s427_s0, %s427_s0  ;;  %p3617_p7 = scmp.lt.s32.totalorder %s3615_s17, %s3608_s30 }
  0x21   : > { %p3611_p0 = pnand %p3609_p13, %p3599_p12 }
  0x22   : > { %p3618_p10 = por %p3617_p7, %p3616_p5 }
  0x23   : > { %p3612_p3 = pneg %p3611_p0 }
  0x25   : > { %p3619_p9 = pnand %p3618_p10, %p3612_p3 }
  0x27   : > { %3622 = shalt.err (!%p3619_p9)
}
  0x28   : > { %s4594_s2 = sld [smem:[#allocation24_spill]]  ;;  %s3634_s20 = scalar_lea.vmem %s438_s18, 16 }
  0x29   : > { %p3635_p1 = scmp.ne.s32.totalorder %s438_s18, %s3634_s20  ;;  %s3641_s16 = scalar_lea.vmem %s438_s18, 32 }
  0x2a   : > { %p3642_p0 = scmp.lt.s32.totalorder %s438_s18, %s438_s18  ;;  %p3643_p6 = scmp.lt.s32.totalorder %s3641_s16, %s3634_s20 }
  0x2b   : > { %p3637_p2 = pnand %p3635_p1, %p3599_p12 }
  0x2c   : > { %p3644_p4 = por %p3643_p6, %p3642_p0 }
  0x2d   : > { %p3638_p13 = pneg %p3637_p2 }
  0x2e   : > { %3472 = dma.hbm_to_vmem [thread:$0]  (!%p3939_p11), %s4594_s2, 16, %s427_s0, [#allocation7]  }
  0x2f   : > { %p3645_p5 = pnand %p3644_p4, %p3638_p13 }
  0x31   : > { %3648 = shalt.err (!%p3645_p5)
}
  0x32   : > { %s4595_s3 = sld [smem:[#allocation25_spill]]  ;;  %p41_p1 = scmp.eq.s32.totalorder %s40_s26, 0 }
  0x33   : > { %s43_s16 = sadd.s32 1, %s3777_s23  ;;  %p50_p2 = scmp.ne.s32.totalorder %s3777_s23, %s3773_s22 }
  0x34   : > { %p51_p4 = scmp.eq.s32.totalorder %s3781_s24, 0  ;;  %p4597_p9 = scmp.eq.s32.totalorder %s3911_s25, 1 }
  0x35   : > { %s3971_s21 = scalar_select %p41_p1, %s3777_s23, %s43_s16  }
  0x36   : > { %p52_p6 = por %p51_p4, %p50_p2  ;;  %p3975_p12 = por %p4597_p9, %p50_p2 }
  0x37   : > { %4596 = sst [smem:[#allocation21_spill]] %s3971_s21  ;;  %p3489_p3 = scmp.lt.s32.totalorder %s3781_s24, 2 }
  0x38   : > { %3475 = dma.hbm_to_vmem [thread:$0]  (!%p3939_p11), %s4595_s3, 16, %s438_s18, [#allocation10]  }
  0x39   : > { %s4598_s28 = scalar_select %p3975_p12, 1, 0 }
  0x3a   : > { %s3981_s0 = sand.u32 1, %s3777_s23   ;;  %s3092_s18 = sshll.u32 %s3781_s24, 7 }
  0x3b   : > { %4599 = sst [smem:[#allocation22_spill]] %s4598_s28  ;;  %s3091_s19 = sshll.u32 %s3981_s0, 3 }
  0x3c   : > { %s4600_s30 = sld [smem:[#allocation23_spill]]  ;;  %s488_s16 = scalar_lea.vmem [#allocation3], %s3091_s19 }
  0x3d   : > { %s495_s2 = sshll.u32 %s488_s16, 4  ;;  %p3992_p11 = pnand %p3489_p3, %p52_p6  ;;  %s3990_s2 = int_to_ptr.vmem [resolvable:$true] %s495_s2 }
  0x3e   : > { %s485_s23 = scalar_lea.sflag [#allocation4], %s3981_s0 }
  0x3f   : > { %p3651_p10 = pneg %p3992_p11 }
  0x42   : > { %s3988_s17 = scalar_lea.hbm %s4600_s30, %s3092_s18  ;;  %s3654_s20 = scalar_lea.hbm %s4600_s30, 256 }
  0x43   : > { %s3649_s28 = scalar_lea.hbm %s3988_s17, 128  ;;  %p3655_p5 = scmp.lt.s32.totalorder %s3988_s17, %s4600_s30 }
  0x44   : > { %p3650_p7 = scmp.ne.s32.totalorder %s3988_s17, %s3649_s28  ;;  %p3656_p1 = scmp.lt.s32.totalorder %s3654_s20, %s3649_s28 }
  0x46   : > { %p3652_p13 = pnand %p3651_p10, %p3650_p7  ;;  %p3657_p2 = por %p3656_p1, %p3655_p5 }
  0x48   : > { %p3653_p0 = pneg %p3652_p13 }
  0x4a   : > { %p3658_p4 = pnand %p3657_p2, %p3653_p0 }
  0x4c   : > { %3661 = shalt.err (!%p3658_p4)
}
  0x4d   : > { %s3662_s21 = scalar_lea.vmem %s3990_s2, 128  ;;  %s3785_s19 = smov [#allocation3]  }
  0x4e   : > { %p3663_p6 = scmp.ne.s32.totalorder %s3990_s2, %s3662_s21  ;;  %s3667_s18 = sshll.u32 %s3785_s19, 4  ;;  %s3668_s18 = int_to_ptr.vmem [resolvable:$false] %s3667_s18 }
  0x4f   : > { %s3669_s15 = scalar_lea.vmem %s3668_s18, 256  ;;  %p3670_p7 = scmp.lt.s32.totalorder %s3990_s2, %s3668_s18 }
  0x50   : > { %p3665_p9 = pnand %p3663_p6, %p3651_p10  ;;  %p3671_p13 = scmp.lt.s32.totalorder %s3669_s15, %s3662_s21 }
  0x52   : > { %p3666_p3 = pneg %p3665_p9  ;;  %p3672_p12 = por %p3671_p13, %p3670_p7 }
  0x54   : > { %p3673_p5 = pnand %p3672_p12, %p3666_p3 }
  0x56   : > { %3676 = shalt.err (!%p3673_p5)
}
  0x57   : > { %3479 = dma.hbm_to_vmem [thread:$0]  (!%p3992_p11), %s3988_s17, 128, %s3990_s2, %s485_s23  }
  0x58   : > { %s3093_s28 = sshll.u32 %s3781_s24, 4  ;;  %s505_s20 = scalar_lea.vmem [#allocation6], %s3981_s0 }
  0x59   : > { %s512_s26 = sshll.u32 %s505_s20, 4  ;;  %s510_s18 = scalar_lea.hbm %s4539_s1, %s3093_s28  ;;  %s513_s26 = int_to_ptr.vmem [resolvable:$true] %s512_s26 }
  0x5a   : > { %s4602_s15 = sand.u32 1, %s3781_s24   ;;  %s3677_s30 = scalar_lea.hbm %s510_s18, 16 }
  0x5b   : > { %s503_s21 = scalar_lea.sflag [#allocation7], %s4602_s15  ;;  %p3678_p12 = scmp.ne.s32.totalorder %s510_s18, %s3677_s30 }
  0x5c   : > { %s3682_s2 = scalar_lea.hbm %s4539_s1, 32  ;;  %p3683_p2 = scmp.lt.s32.totalorder %s510_s18, %s4539_s1 }
  0x5d   : > { %p3680_p0 = pnand %p3678_p12, %p3651_p10  ;;  %p3684_p4 = scmp.lt.s32.totalorder %s3682_s2, %s3677_s30 }
  0x5f   : > { %p3681_p1 = pneg %p3680_p0  ;;  %p3685_p6 = por %p3684_p4, %p3683_p2 }
  0x61   : > { %p3686_p9 = pnand %p3685_p6, %p3681_p1 }
  0x63   : > { %3689 = shalt.err (!%p3686_p9)
}
  0x64   : > { %s3690_s17 = scalar_lea.vmem %s513_s26, 16  ;;  %s3786_s28 = smov [#allocation6]  }
  0x65   : > { %p3691_p3 = scmp.ne.s32.totalorder %s513_s26, %s3690_s17  ;;  %s3695_s20 = sshll.u32 %s3786_s28, 4  ;;  %s3696_s20 = int_to_ptr.vmem [resolvable:$false] %s3695_s20 }
  0x66   : > { %s3697_s13 = scalar_lea.vmem %s3696_s20, 32  ;;  %p3698_p5 = scmp.lt.s32.totalorder %s513_s26, %s3696_s20 }
  0x67   : > { %p3693_p7 = pnand %p3691_p3, %p3651_p10  ;;  %p3699_p12 = scmp.lt.s32.totalorder %s3697_s13, %s3690_s17 }
  0x69   : > { %p3694_p13 = pneg %p3693_p7  ;;  %p3700_p0 = por %p3699_p12, %p3698_p5 }
  0x6b   : > { %p3701_p8 = pnand %p3700_p0, %p3694_p13 }
  0x6d   : > { %3704 = shalt.err (!%p3701_p8)
}
  0x6e   : > { %3482 = dma.hbm_to_vmem [thread:$0]  (!%p3992_p11), %s510_s18, 16, %s513_s26, %s503_s21  }
  0x6f   : > { %p4603_p1 = scmp.ne.s32.totalorder %s4591_s29, 0 }
  0x70   : > { %s4046_s14 = sand.u32 (!%p4603_p1), 1, %s3773_s22   ;;  %p4604_p10 = scmp.ne.s32.totalorder (!%p4603_p1), %s4588_s27, 0 }
  0x71   : > { %521 = sbr.rel (%p4603_p1) target bundleno = 5967 (0x174f), region = 84  ;;  %s3095_s30 = sshll.u32 (!%p4603_p1), %s4046_s14, 3 }
  0x72   : > { %s524_s16 = scalar_lea.sflag (!%p4603_p1), [#allocation4], %s4046_s14  ;;  %s527_s19 = scalar_lea.vmem (!%p4603_p1), [#allocation3], %s3095_s30 }
  0x76   : > { %3748 = dma.done.wait (%p4604_p10), %s524_s16, 128  }
  0x77   : > { %3750 = vsyncadd (%p4604_p10), %s524_s16, 4294967168  ;;  %s532_s3 = sand.u32 1, %s3911_s25   ;;  %s4572_s26 = scalar_lea.vmem [#allocation6], %s4046_s14 }
  0x78   : > { %s533_s29 = scalar_lea.sflag [#allocation7], %s532_s3 }
  0x79   : > { %3752 = dma.done.wait (%p4604_p10), %s533_s29, 16  }
  0x7a   : > { %3754 = vsyncadd (%p4604_p10), %s533_s29, 4294967280  ;;  %p4605_p8 = scmp.eq.s32.totalorder %s3911_s25, 0 }
  0x7c   : > { %3756 = dma.done.wait (%p4605_p8), [#allocation7], 16   ;;  %p4606_p11 = pmov %p4605_p8 }
  0x7d   : > { %p4607_p2 = pmov %p4605_p8 }
  0x7e   : > { %3758 = vsyncadd (%p4606_p11), [#allocation7], 4294967280 }
  0x7f   : > { %3760 = dma.done.wait (%p4607_p2), [#allocation10], 16   ;;  %p4608_p4 = pmov %p4607_p2 }
  0x80   : > { %vm601_vm0 = vcmask 261120   ;;  %v595_v0 = vld [vmem:[%s527_s19] sm:$0xff]  ;;  %v633_v7 = vld [vmem:[%s4542_s4 + $0x18] sm:$0xff]  ;;  %v3787_v8 = vmov 0.0   ;;  %vm3788_vm1 = vmmov 0   ;;  %v630_v11 = vld [vmem:[%s4542_s4] sm:$0xff]  ;;  %v794_v27 = vlaneseq }
  0x81   : > { %3762 = vsyncadd (%p4608_p4), [#allocation10], 4294967280  ;;  %v602_v1 = vsel %vm601_vm0, %v595_v0, 0.0  ;;  %3262 = vmatprep.subr.mxu1 %v3787_v8  ;;  %v632_v9 = vld [vmem:[%s4542_s4 + $0x10] sm:$0xff]  ;;  %3270 = vmatprep.mubr.msk.f32.mxu1 %vm3788_vm1, %v3787_v8  ;;  %v631_v10 = vld [vmem:[%s4542_s4 + $0x8] sm:$0xff]  ;;  %s3789_s13 = smov 64  }
  0x82   : > { %603 = vadd.xlane.f32.xlu0 %v602_v1  ;;  %3263 = vmatpush3.msra.mxu1 %v633_v7  ;;  %v3098_v16 = vld [vmem:[#allocation8] ss:$0 sm:$0xff]  ;;  %v3099_v18 = vld [vmem:[#allocation9] ss:$0 sm:$0xff]  ;;  %v3100_v21 = vld [vmem:[%s4543_s5] ss:$0 sm:$0xff] }
  0x83   : > { %3278 = vmatprep.subr.mxu0 %v3787_v8  ;;  %3264 = vmatprep.subr.mxu1 %v3787_v8  ;;  %s3790_s30 = smov 96   ;;  %s3791_s16 = smov 88   ;;  %vm717_vm2 = vcmask 64512   ;;  %v596_v28 = vld [vmem:[%s4572_s26] sm:$0x1]  ;;  %v795_v30 = vshrl.u32 %v794_v27, 7 }
  0x84   : > { %3280 = vmatprep.mubr.msk.f32.mxu0 %vm3788_vm1, %v3787_v8  ;;  %3265 = vmatpush3.msra.mxu1 %v632_v9  ;;  %v597_v29 = vsub.f32 1.0, %v596_v28  ;;  %s3792_s19 = smov 80   ;;  %s3793_s3 = smov 120   ;;  %vm1059_vm3 = vcmask 130112   ;;  %vm1232_vm4 = vcmask 195712   ;;  %vm1405_vm5 = vcmask 261312  }
  0x85   : > { %3266 = vmatprep.subr.mxu1 %v3787_v8  ;;  %v796_v32 = vsub.s32 0, %v795_v30  ;;  %s3794_s29 = smov 112   ;;  %s3795_s27 = smov 72   ;;  %vm1648_vm7 = vcmask 523264   ;;  %vm2948_vm9 = vcmask 57344   ;;  %vm2966_vm10 = vcmask 253952  }
  0x86   : > { %3267 = vmatpush3.msra.mxu1 %v631_v10  ;;  %v598_v31 = vmul.f32 -1e+09, %v597_v29  ;;  %s3796_s18 = smov 104   ;;  %s4578_s15 = smov 48  }
  0x87   : > { %3268 = vmatprep.subr.mxu1 %v3787_v8  ;;  %s4574_s21 = smov 40   ;;  %s4573_s2 = smov 56  }
  0x88   : > { %3269 = vmatpush3.msra.mxu1 %v630_v11  ;;  %v4118_v33 = vrot.slane %v598_v31, %v796_v32  ;;  %s4577_s23 = smov 8   ;;  %s4576_s26 = smov 16  }
  0x89   : > { %3273 = vmatprep.subr.mxu1 %v3787_v8  ;;  %s4575_s0 = smov 24   ;;  %s4610_s20 = sld [smem:[#allocation27_spill]] }
  0x8a   : > { %s4620_s17 = sld [smem:[#allocation29_spill]] }
 0x10b   : > { %v604_v2 = vpop.xlane.xlu0 %603 }
 0x10c   : > { %v606_v3 = vmul.f32 0.03125, %v604_v2 }
 0x10e   : > { %v607_v4 = vsub.f32 %v595_v0, %v606_v3 }
 0x110   : > { %v608_v5 = vmul.f32 %v607_v4, %v607_v4 }
 0x112   : > { %v609_v6 = vsel %vm601_vm0, %v608_v5, 0.0 }
 0x113   : > { %610 = vadd.xlane.f32.xlu0 %v609_v6 }
 0x19c   : > { %v611_v12 = vpop.xlane.xlu0 %610 }
 0x19d   : > { %v612_v13 = vmul.f32 0.03125, %v611_v12 }
 0x19f   : > { %v613_v14 = vadd.f32 1e-12, %v612_v13 }
 0x1a1   : > { %3544 = vrsqrt.f32 %v613_v14 }
 0x1ae   : > { %v3545_v15 = vpop.eup %3544 }
 0x1af   : > { %v615_v17 = vmul.f32 %v3545_v15, %v607_v4 }
 0x1b1   : > { %v622_v19 = vmul.f32 %v3098_v16, %v615_v17 }
 0x1b3   : > { %v4092_v20 = vadd.f32 %v3099_v18, %v622_v19 }
 0x1b5   : > { %3271 = vmatmul.mubr.msk.f32.vlgmr.msra.gmra.mxu1 %vm601_vm0, %v4092_v20 }
 0x1b6   : > { %3275 = vmatprep.mubr.msk.f32.mxu1 %vm3788_vm1, %v3787_v8 }
 0x275   : > { %v710_v22 = vpop.f32.mrf.mxu1 }
 0x276   : > { %v4101_v23 = vadd.f32 %v3100_v21, %v710_v22 }
 0x277   : > { %v3272_v24 = vpop.f32.mrf.mxu1 }
 0x278   : > { %811 = vrot.lane.b32.xlu0 %v4101_v23, %s3789_s13  ;;  %715 = vrot.lane.b32.xlu1 %v4101_v23, %s3790_s30 }
 0x27c   : > { %890 = vrot.lane.b32.xlu0 %v4101_v23, %s3791_s16 }
 0x2ea   : > { %v812_v25 = vpop.permute.xlu0 %811  ;;  %v716_v26 = vpop.permute.xlu1 %715 }
 0x2eb   : > { %3274 = vmatpush3.xpose.msk.msra.mxu1 %vm717_vm2, %v716_v26  ;;  %3279 = vmatpush3.msra.mxu0 %v812_v25 }
 0x2ec   : > { %3283 = vmatprep.subr.mxu0 %v3787_v8  ;;  %3288 = vmatprep.subr.mxu1 %v3787_v8 }
 0x2ee   : > { %3276 = vmatmul.mubr.msk.f32.vlgmr.msra.gmra.mxu1 %vm717_vm2, %v4101_v23  ;;  %v891_v44 = vpop.permute.xlu0 %890 }
 0x2ef   : > { %3290 = vmatprep.mubr.msk.f32.mxu1 %vm3788_vm1, %v3787_v8 }
 0x3ae   : > { %v788_v34 = vpop.f32.mrf.mxu1 }
 0x3af   : > { %v792_v35 = vmul.f32 0.35355338, %v788_v34 }
 0x3b0   : > { %v3277_v36 = vpop.f32.mrf.mxu1 }
 0x3b1   : > { %v799_v37 = vadd.f32 %v4118_v33, %v792_v35  ;;  %v1411_v36 = vld [vmem:[%s4544_s6 + $0x18] sm:$0xff] }
 0x3b3   : > { %v800_v38 = vsel %vm717_vm2, %v799_v37, -inf }
 0x3b4   : > { %801 = vmax.xlane.f32.xlu1 %v800_v38  ;;  %v1409_v38 = vld [vmem:[%s4544_s6 + $0x8] sm:$0xff] }
 0x3c5   : > { %1063 = vrot.lane.b32.xlu1 %v4101_v23, %s3792_s19 }
 0x43d   : > { %v802_v39 = vpop.xlane.xlu1 %801 }
 0x43e   : > { %v803_v40 = vsub.f32 %v799_v37, %v802_v39  ;;  %v1410_v37 = vld [vmem:[%s4544_s6 + $0x10] sm:$0xff] }
 0x440   : > { %v804_v41 = vmul.f32 1.442695, %v803_v40  ;;  %v1408_v40 = vld [vmem:[%s4544_s6] sm:$0xff] }
 0x441   : > { %v1064_v50 = vpop.permute.xlu1 %1063 }
 0x442   : > { %3546 = vpow2.f32 %v804_v41 }
 0x44f   : > { %v3547_v42 = vpop.eup %3546 }
 0x450   : > { %v806_v43 = vsel %vm717_vm2, %v3547_v42, 0.0 }
 0x451   : > { %807 = vadd.xlane.f32.xlu0 %v806_v43 }
 0x467   : > { %888 = vrot.lane.b32.xlu0 %v4101_v23, %s3793_s3 }
 0x46b   : > { %1061 = vrot.lane.b32.xlu0 %v4101_v23, %s3794_s29 }
 0x46f   : > { %1236 = vrot.lane.b32.xlu0 %v4101_v23, %s3795_s27 }
 0x473   : > { %1234 = vrot.lane.b32.xlu0 %v4101_v23, %s3796_s18 }
 0x4da   : > { %v808_v45 = vpop.xlane.xlu0 %807 }
 0x4db   : > { %3548 = vrcp.f32 %v808_v45 }
 0x4de   : > { %v889_v46 = vpop.permute.xlu0 %888 }
 0x4e2   : > { %v1062_v49 = vpop.permute.xlu0 %1061 }
 0x4e6   : > { %v1237_v51 = vpop.permute.xlu0 %1236 }
 0x4e8   : > { %v3549_v47 = vpop.eup %3548 }
 0x4e9   : > { %v810_v48 = vmul.f32 %v3549_v47, %v3547_v42 }
 0x4ea   : > { %v1235_v52 = vpop.permute.xlu0 %1234 }
 0x4eb   : > { %3281 = vmatmul.mubr.msk.f32.vlgmr.msra.gmra.mxu0 %vm717_vm2, %v810_v48 }
 0x4ec   : > { %3284 = vmatpush3.xpose.msk.msra.mxu0 %vm717_vm2, %v891_v44  ;;  %3285 = vmatprep.mubr.msk.f32.mxu0 %vm3788_vm1, %v3787_v8 }
 0x4ed   : > { %3293 = vmatprep.subr.mxu0 %v3787_v8 }
 0x4ef   : > { %3286 = vmatmul.mubr.msk.f32.vlgmr.msra.gmra.mxu0 %vm717_vm2, %v889_v46 }
 0x4f0   : > { %3294 = vmatpush3.xpose.msk.msra.mxu0 %vm717_vm2, %v1064_v50  ;;  %3295 = vmatprep.mubr.msk.f32.mxu0 %vm3788_vm1, %v3787_v8  ;;  %v3114_v50 = vld [vmem:[%s4545_s7] ss:$0 sm:$0xff] }
 0x4f1   : > { %3303 = vmatprep.subr.mxu0 %v3787_v8 }
 0x4f3   : > { %3296 = vmatmul.mubr.msk.f32.vlgmr.msra.gmra.mxu0 %vm717_vm2, %v1062_v49 }
 0x4f4   : > { %3304 = vmatpush3.xpose.msk.msra.mxu0 %vm717_vm2, %v1237_v51  ;;  %3305 = vmatprep.mubr.msk.f32.mxu0 %vm3788_vm1, %v3787_v8 }
 0x4f5   : > { %3313 = vmatprep.subr.mxu0 %v3787_v8 }
 0x4f7   : > { %3306 = vmatmul.mubr.msk.f32.vlgmr.msra.gmra.mxu0 %vm717_vm2, %v1235_v52 }
 0x4f8   : > { %3321 = vmatprep.mubr.msk.f32.mxu0 %vm3788_vm1, %v3787_v8  ;;  %3314 = vmatpush3.msra.mxu0 %v1411_v36 }
 0x4f9   : > { %3315 = vmatprep.subr.mxu0 %v3787_v8 }
 0x4fa   : > { %3316 = vmatpush3.msra.mxu0 %v1410_v37 }
 0x4fb   : > { %3317 = vmatprep.subr.mxu0 %v3787_v8 }
 0x4fc   : > { %3318 = vmatpush3.msra.mxu0 %v1409_v38 }
 0x4fd   : > { %3319 = vmatprep.subr.mxu0 %v3787_v8 }
 0x4fe   : > { %3320 = vmatpush3.msra.mxu0 %v1408_v40 }
 0x4ff   : > { %3335 = vmatprep.subr.mxu0 %v3787_v8 }
 0x5ab   : > { %v883_v53 = vpop.f32.mrf.mxu0 }
 0x5ac   : > { %887 = vst.msk [vmem:[#allocation2] sm:$0xff] %vm717_vm2, %v883_v53 }
 0x5ad   : > { %v3282_v54 = vpop.f32.mrf.mxu0 }
 0x5af   : > { %v962_v55 = vpop.f32.mrf.mxu0 }
 0x5b0   : > { %v966_v56 = vmul.f32 0.35355338, %v962_v55 }
 0x5b1   : > { %v3287_v57 = vpop.f32.mrf.mxu0 }
 0x5b2   : > { %v967_v58 = vadd.f32 %v966_v56, %v4118_v33 }
 0x5b3   : > { %v1135_v59 = vpop.f32.mrf.mxu0 }
 0x5b4   : > { %v1139_v60 = vmul.f32 0.35355338, %v1135_v59  ;;  %v968_v61 = vsel %vm717_vm2, %v967_v58, -inf }
 0x5b5   : > { %969 = vmax.xlane.f32.xlu0 %v968_v61  ;;  %v3297_v62 = vpop.f32.mrf.mxu0  ;;  %v1525_v61 = vld [vmem:[%s4548_s10 + $0x18] sm:$0xff] }
 0x5b6   : > { %v1140_v63 = vadd.f32 %v1139_v60, %v4118_v33  ;;  %v1524_v62 = vld [vmem:[%s4548_s10 + $0x10] sm:$0xff] }
 0x5b7   : > { %v1308_v0 = vpop.f32.mrf.mxu0 }
 0x5b8   : > { %v1312_v1 = vmul.f32 0.35355338, %v1308_v0  ;;  %v1141_v2 = vsel %vm717_vm2, %v1140_v63, -inf }
 0x5b9   : > { %1142 = vmax.xlane.f32.xlu1 %v1141_v2  ;;  %v3307_v3 = vpop.f32.mrf.mxu0 }
 0x5ba   : > { %v1313_v4 = vadd.f32 %v1312_v1, %v4118_v33 }
 0x5bc   : > { %v1314_v5 = vsel %vm717_vm2, %v1313_v4, -inf }
 0x5bd   : > { %1315 = vmax.xlane.f32.xlu0 %v1314_v5 }
 0x5ca   : > { %1152 = vrot.lane.b32.xlu1 %v4101_v23, %s4578_s15  ;;  %s4611_s15 = sld [smem:[#allocation28_spill]] }
 0x63e   : > { %v970_v6 = vpop.xlane.xlu0 %969 }
 0x63f   : > { %v971_v7 = vsub.f32 %v967_v58, %v970_v6  ;;  %v3117_v6 = vld [vmem:[%s4547_s9] ss:$0 sm:$0xff] }
 0x641   : > { %v972_v9 = vmul.f32 1.442695, %v971_v7 }
 0x642   : > { %v1143_v10 = vpop.xlane.xlu1 %1142 }
 0x643   : > { %3550 = vpow2.f32 %v972_v9  ;;  %v1144_v11 = vsub.f32 %v1140_v63, %v1143_v10  ;;  %v1522_v63 = vld [vmem:[%s4548_s10] sm:$0xff]  ;;  %v1640_v10 = vld [vmem:[%s4550_s12 + $0x38] sm:$0xff] }
 0x645   : > { %v1145_v12 = vmul.f32 1.442695, %v1144_v11  ;;  %v1639_v11 = vld [vmem:[%s4550_s12 + $0x30] sm:$0xff] }
 0x646   : > { %v1316_v13 = vpop.xlane.xlu0 %1315  ;;  %v1153_v25 = vpop.permute.xlu1 %1152 }
 0x647   : > { %3552 = vpow2.f32 %v1145_v12  ;;  %v1317_v14 = vsub.f32 %v1313_v4, %v1316_v13  ;;  %v3116_v4 = vld [vmem:[%s4546_s8] ss:$0 sm:$0xff]  ;;  %v1638_v12 = vld [vmem:[%s4550_s12 + $0x28] sm:$0xff] }
 0x648   : > { %v1637_v13 = vld [vmem:[%s4550_s12 + $0x20] sm:$0xff] }
 0x649   : > { %v1318_v15 = vmul.f32 1.442695, %v1317_v14  ;;  %v1636_v14 = vld [vmem:[%s4550_s12 + $0x18] sm:$0xff] }
 0x64b   : > { %3554 = vpow2.f32 %v1318_v15  ;;  %v1635_v15 = vld [vmem:[%s4550_s12 + $0x10] sm:$0xff] }
 0x650   : > { %v3551_v16 = vpop.eup %3550 }
 0x651   : > { %v974_v17 = vsel %vm717_vm2, %v3551_v16, 0.0 }
 0x652   : > { %975 = vadd.xlane.f32.xlu0 %v974_v17  ;;  %v1633_v17 = vld [vmem:[%s4550_s12] sm:$0xff] }
 0x654   : > { %v3553_v18 = vpop.eup %3552 }
 0x655   : > { %v1147_v19 = vsel %vm717_vm2, %v3553_v18, 0.0 }
 0x656   : > { %1148 = vadd.xlane.f32.xlu0 %v1147_v19 }
 0x658   : > { %v3555_v21 = vpop.eup %3554 }
 0x659   : > { %v1320_v22 = vsel %vm717_vm2, %v3555_v21, 0.0 }
 0x65a   : > { %1321 = vadd.xlane.f32.xlu1 %v1320_v22 }
 0x66b   : > { %1325 = vrot.lane.b32.xlu1 %v4101_v23, %s4574_s21  ;;  %s4616_s21 = smov 16  }
 0x66c   : > { %979 = vrot.lane.b32.xlu0 %v4101_v23, %s4573_s2  ;;  %s4617_s2 = smov 24  }
 0x6db   : > { %v976_v24 = vpop.xlane.xlu0 %975 }
 0x6dc   : > { %3556 = vrcp.f32 %v976_v24 }
 0x6df   : > { %v1149_v26 = vpop.xlane.xlu0 %1148 }
 0x6e0   : > { %3558 = vrcp.f32 %v1149_v26 }
 0x6e3   : > { %v1322_v27 = vpop.xlane.xlu1 %1321  ;;  %v980_v28 = vpop.permute.xlu0 %979 }
 0x6e4   : > { %3560 = vrcp.f32 %v1322_v27  ;;  %3289 = vmatpush3.msra.mxu1 %v980_v28 }
 0x6e5   : > { %3298 = vmatprep.subr.mxu1 %v3787_v8 }
 0x6e7   : > { %v1326_v32 = vpop.permute.xlu1 %1325 }
 0x6e9   : > { %v3557_v29 = vpop.eup %3556 }
 0x6ea   : > { %v978_v30 = vmul.f32 %v3557_v29, %v3551_v16  ;;  %v1634_v16 = vld [vmem:[%s4550_s12 + $0x8] sm:$0xff] }
 0x6ec   : > { %3291 = vmatmul.mubr.msk.f32.vlgmr.msra.gmra.mxu1 %vm717_vm2, %v978_v30 }
 0x6ed   : > { %v3559_v31 = vpop.eup %3558  ;;  %3299 = vmatpush3.msra.mxu1 %v1153_v25  ;;  %3300 = vmatprep.mubr.msk.f32.mxu1 %vm3788_vm1, %v3787_v8 }
 0x6ee   : > { %3308 = vmatprep.subr.mxu1 %v3787_v8  ;;  %v1151_v23 = vmul.f32 %v3559_v31, %v3553_v18  ;;  %v3118_v18 = vld [vmem:[%s4549_s11] ss:$0 sm:$0xff] }
 0x6f0   : > { %3301 = vmatmul.mubr.msk.f32.vlgmr.msra.gmra.mxu1 %vm717_vm2, %v1151_v23 }
 0x6f1   : > { %v3561_v34 = vpop.eup %3560  ;;  %3309 = vmatpush3.msra.mxu1 %v1326_v32  ;;  %3310 = vmatprep.mubr.msk.f32.mxu1 %vm3788_vm1, %v3787_v8 }
 0x6f2   : > { %v1324_v35 = vmul.f32 %v3561_v34, %v3555_v21  ;;  %3324 = vmatprep.subr.mxu1 %v3787_v8 }
 0x6f4   : > { %3311 = vmatmul.mubr.msk.f32.vlgmr.msra.gmra.mxu1 %vm717_vm2, %v1324_v35 }
 0x6f5   : > { %3332 = vmatprep.mubr.msk.f32.mxu1 %vm3788_vm1, %v3787_v8  ;;  %3325 = vmatpush3.msra.mxu1 %v1525_v61  ;;  %v3126_v61 = vld [vmem:[%s4542_s4 + $0x30] sm:$0xff] }
 0x6f6   : > { %3326 = vmatprep.subr.mxu1 %v3787_v8 }
 0x6f7   : > { %3327 = vmatpush3.msra.mxu1 %v1524_v62  ;;  %v3125_v62 = vld [vmem:[%s4542_s4 + $0x28] sm:$0xff] }
 0x6f8   : > { %3328 = vmatprep.subr.mxu1 %v3787_v8 }
 0x7ac   : > { %v1051_v39 = vpop.f32.mrf.mxu1 }
 0x7ad   : > { %1056 = vrot.lane.b32.xlu1 %v1051_v39, %s4577_s23  ;;  %s2969_s23 = scalar_lea.sflag [#allocation5], %s4046_s14 }
 0x7ae   : > { %v3292_v41 = vpop.f32.mrf.mxu1 }
 0x7b0   : > { %v1224_v42 = vpop.f32.mrf.mxu1 }
 0x7b1   : > { %1229 = vrot.lane.b32.xlu0 %v1224_v42, %s4576_s26  ;;  %s4615_s26 = smov 8  }
 0x7b2   : > { %v3302_v43 = vpop.f32.mrf.mxu1 }
 0x7b4   : > { %v1397_v44 = vpop.f32.mrf.mxu1 }
 0x7b5   : > { %1402 = vrot.lane.b32.xlu1 %v1397_v44, %s4575_s0  ;;  %s4609_s0 = sld [smem:[#allocation26_spill]] }
 0x7b6   : > { %v3312_v45 = vpop.f32.mrf.mxu1 }
 0x81f   : > { %v1057_v46 = vpop.permute.xlu1 %1056 }
 0x820   : > { %1060 = vst.msk [vmem:[#allocation2] sm:$0xff] %vm1059_vm3, %v1057_v46 }
 0x823   : > { %v1230_v47 = vpop.permute.xlu0 %1229 }
 0x824   : > { %1233 = vst.msk [vmem:[#allocation2] sm:$0xff] %vm1232_vm4, %v1230_v47 }
 0x827   : > { %v1403_v48 = vpop.permute.xlu1 %1402 }
 0x828   : > { %1406 = vst.msk [vmem:[#allocation2] sm:$0xff] %vm1405_vm5, %v1403_v48 }
 0x82f   : > { %v1407_v49 = vld [vmem:[#allocation2] sm:$0xff] }
 0x830   : > { %3322 = vmatmul.mubr.msk.f32.vlgmr.msra.gmra.mxu0 %vm601_vm0, %v1407_v49  ;;  %v3120_v49 = vld [vmem:[%s4609_s0] ss:$0 sm:$0xff] }
 0x831   : > { %3351 = vmatprep.mubr.msk.f32.mxu0 %vm3788_vm1, %v3787_v8  ;;  %3336 = vmatpush3.msra.mxu0 %v1640_v10 }
 0x832   : > { %3337 = vmatprep.subr.mxu0 %v3787_v8 }
 0x833   : > { %3338 = vmatpush3.msra.mxu0 %v1639_v11 }
 0x834   : > { %3339 = vmatprep.subr.mxu0 %v3787_v8 }
 0x835   : > { %3340 = vmatpush3.msra.mxu0 %v1638_v12 }
 0x836   : > { %3341 = vmatprep.subr.mxu0 %v3787_v8 }
 0x837   : > { %3342 = vmatpush3.msra.mxu0 %v1637_v13 }
 0x838   : > { %3343 = vmatprep.subr.mxu0 %v3787_v8 }
 0x839   : > { %3344 = vmatpush3.msra.mxu0 %v1636_v14 }
 0x83a   : > { %3345 = vmatprep.subr.mxu0 %v3787_v8 }
 0x83b   : > { %3346 = vmatpush3.msra.mxu0 %v1635_v15 }
 0x83c   : > { %3347 = vmatprep.subr.mxu0 %v3787_v8 }
 0x83d   : > { %3348 = vmatpush3.msra.mxu0 %v1634_v16 }
 0x83e   : > { %3349 = vmatprep.subr.mxu0 %v3787_v8 }
 0x83f   : > { %3350 = vmatpush3.msra.mxu0 %v1633_v17 }
 0x840   : > { %3375 = vmatprep.subr.mxu0 %v3787_v8 }
 0x8f0   : > { %v1488_v51 = vpop.f32.mrf.mxu0 }
 0x8f1   : > { %v1489_v52 = vadd.f32 %v3114_v50, %v1488_v51 }
 0x8f2   : > { %v3323_v53 = vpop.f32.mrf.mxu0 }
 0x8f3   : > { %v1492_v54 = vadd.f32 %v1489_v52, %v4092_v20  ;;  %v1523_v20 = vld [vmem:[%s4548_s10 + $0x8] sm:$0xff] }
 0x8f4   : > { %3329 = vmatpush3.msra.mxu1 %v1523_v20  ;;  %v3124_v20 = vld [vmem:[%s4542_s4 + $0x20] sm:$0xff] }
 0x8f5   : > { %v1495_v55 = vsel %vm601_vm0, %v1492_v54, 0.0  ;;  %3330 = vmatprep.subr.mxu1 %v3787_v8 }
 0x8f6   : > { %1496 = vadd.xlane.f32.xlu0 %v1495_v55  ;;  %3331 = vmatpush3.msra.mxu1 %v1522_v63 }
 0x8f7   : > { %3354 = vmatprep.subr.mxu1 %v3787_v8 }
 0x97f   : > { %v1497_v56 = vpop.xlane.xlu0 %1496 }
 0x980   : > { %v1498_v57 = vmul.f32 0.03125, %v1497_v56 }
 0x982   : > { %v1499_v58 = vsub.f32 %v1492_v54, %v1498_v57 }
 0x984   : > { %v1500_v59 = vmul.f32 %v1499_v58, %v1499_v58 }
 0x986   : > { %v1501_v60 = vsel %vm601_vm0, %v1500_v59, 0.0 }
 0x987   : > { %1502 = vadd.xlane.f32.xlu1 %v1501_v60  ;;  %v3127_v60 = vld [vmem:[%s4542_s4 + $0x38] sm:$0xff] }
 0xa10   : > { %v1503_v0 = vpop.xlane.xlu1 %1502 }
 0xa11   : > { %v1504_v1 = vmul.f32 0.03125, %v1503_v0 }
 0xa13   : > { %v1505_v2 = vadd.f32 1e-12, %v1504_v1 }
 0xa15   : > { %3562 = vrsqrt.f32 %v1505_v2 }
 0xa22   : > { %v3563_v3 = vpop.eup %3562 }
 0xa23   : > { %v1507_v5 = vmul.f32 %v3563_v3, %v1499_v58  ;;  %v3122_v3 = vld [vmem:[%s4610_s20] ss:$0 sm:$0xff] }
 0xa25   : > { %v1514_v7 = vmul.f32 %v3116_v4, %v1507_v5  ;;  %v3123_v5 = vld [vmem:[%s4611_s15] ss:$0 sm:$0xff] }
 0xa27   : > { %v4232_v9 = vadd.f32 %v3117_v6, %v1514_v7 }
 0xa29   : > { %3333 = vmatmul.mubr.msk.f32.vlgmr.msra.gmra.mxu1 %vm601_vm0, %v4232_v9 }
 0xa2a   : > { %3362 = vmatprep.mubr.msk.f32.mxu1 %vm3788_vm1, %v3787_v8  ;;  %3355 = vmatpush3.msra.mxu1 %v3127_v60 }
 0xa2b   : > { %3356 = vmatprep.subr.mxu1 %v3787_v8 }
 0xa2c   : > { %3357 = vmatpush3.msra.mxu1 %v3126_v61 }
 0xa2d   : > { %3358 = vmatprep.subr.mxu1 %v3787_v8 }
 0xa2e   : > { %3359 = vmatpush3.msra.mxu1 %v3125_v62 }
 0xa2f   : > { %3360 = vmatprep.subr.mxu1 %v3787_v8 }
 0xa30   : > { %3361 = vmatpush3.msra.mxu1 %v3124_v20 }
 0xa31   : > { %3365 = vmatprep.subr.mxu1 %v3787_v8 }
 0xae9   : > { %v1602_v19 = vpop.f32.mrf.mxu1 }
 0xaea   : > { %v1603_v21 = vadd.f32 %v3118_v18, %v1602_v19 }
 0xaeb   : > { %v3334_v22 = vpop.f32.mrf.mxu1 }
 0xaec   : > { %v1607_v24 = vmul.f32 0.70710677, %v1603_v21  ;;  %v1606_v46 = vmul.f32 0.5, %v1603_v21 }
 0xaee   : > { %v1608_v25 = vand.u32 2147483647, %v1607_v24  ;;  %vm1628_vm6 = vcmp.ge.f32.partialorder %v1607_v24, 0.0 }
 0xaf0   : > { %v1609_v26 = vmul.f32 0.3275911, %v1608_v25  ;;  %v1622_v28 = vsub.f32 0.0, %v1608_v25 }
 0xaf2   : > { %v1610_v27 = vadd.f32 1.0, %v1609_v26  ;;  %v1623_v29 = vmul.f32 %v1622_v28, %v1608_v25 }
 0xaf4   : > { %3564 = vrcp.f32 %v1610_v27  ;;  %v1624_v23 = vmul.f32 1.442695, %v1623_v29 }
 0xaf6   : > { %3566 = vpow2.f32 %v1624_v23 }
 0xb01   : > { %v3565_v30 = vpop.eup %3564 }
 0xb02   : > { %v1613_v31 = vmul.f32 1.0614054, %v3565_v30 }
 0xb03   : > { %v3567_v41 = vpop.eup %3566 }
 0xb04   : > { %v1614_v32 = vadd.f32 -1.4531521, %v1613_v31 }
 0xb06   : > { %v1615_v34 = vmul.f32 %v3565_v30, %v1614_v32 }
 0xb08   : > { %v1616_v35 = vadd.f32 1.4214138, %v1615_v34 }
 0xb0a   : > { %v1617_v36 = vmul.f32 %v3565_v30, %v1616_v35 }
 0xb0c   : > { %v1618_v37 = vadd.f32 -0.28449672, %v1617_v36 }
 0xb0e   : > { %v1619_v38 = vmul.f32 %v3565_v30, %v1618_v37 }
 0xb10   : > { %v1620_v39 = vadd.f32 0.2548296, %v1619_v38 }
 0xb12   : > { %v1621_v40 = vmul.f32 %v3565_v30, %v1620_v39 }
 0xb14   : > { %v1626_v42 = vmul.f32 %v3567_v41, %v1621_v40 }
 0xb16   : > { %v1627_v43 = vsub.f32 1.0, %v1626_v42 }
 0xb18   : > { %v1629_v44 = vsub.f32 0.0, %v1627_v43 }
 0xb1a   : > { %v1630_v45 = vsel %vm1628_vm6, %v1627_v43, %v1629_v44 }
 0xb1b   : > { %v1631_v47 = vadd.f32 1.0, %v1630_v45 }
 0xb1d   : > { %v1632_v48 = vmul.f32 %v1631_v47, %v1606_v46 }
 0xb1f   : > { %3352 = vmatmul.mubr.msk.f32.vlgmr.msra.gmra.mxu0 %vm1648_vm7, %v1632_v48 }
 0xb20   : > { %3377 = vmatprep.mubr.msk.f32.mxu0 %vm3788_vm1, %v3787_v8 }
 0xbdf   : > { %v1718_v50 = vpop.f32.mrf.mxu0 }
 0xbe0   : > { %v1719_v51 = vadd.f32 %v3120_v49, %v1718_v50 }
 0xbe1   : > { %v3353_v52 = vpop.f32.mrf.mxu0 }
 0xbe2   : > { %v1722_v53 = vadd.f32 %v1719_v51, %v4232_v9  ;;  %v3129_v9 = vld [vmem:[%s4543_s5 + $0x1] ss:$0 sm:$0xff] }
 0xbe4   : > { %v1725_v54 = vsel %vm601_vm0, %v1722_v53, 0.0 }
 0xbe5   : > { %1726 = vadd.xlane.f32.xlu0 %v1725_v54 }
 0xc6e   : > { %v1727_v55 = vpop.xlane.xlu0 %1726 }
 0xc6f   : > { %v1728_v56 = vmul.f32 0.03125, %v1727_v55 }
 0xc71   : > { %v1729_v57 = vsub.f32 %v1722_v53, %v1728_v56 }
 0xc73   : > { %v1730_v58 = vmul.f32 %v1729_v57, %v1729_v57 }
 0xc75   : > { %v1731_v59 = vsel %vm601_vm0, %v1730_v58, 0.0 }
 0xc76   : > { %1732 = vadd.xlane.f32.xlu0 %v1731_v59 }
 0xcff   : > { %v1733_v63 = vpop.xlane.xlu0 %1732 }
 0xd00   : > { %v1734_v0 = vmul.f32 0.03125, %v1733_v63 }
 0xd02   : > { %v1735_v1 = vadd.f32 1e-12, %v1734_v0 }
 0xd04   : > { %3568 = vrsqrt.f32 %v1735_v1 }
 0xd11   : > { %v3569_v2 = vpop.eup %3568 }
 0xd12   : > { %v1737_v4 = vmul.f32 %v3569_v2, %v1729_v57 }
 0xd14   : > { %v1744_v6 = vmul.f32 %v3122_v3, %v1737_v4 }
 0xd16   : > { %v4304_v7 = vadd.f32 %v3123_v5, %v1744_v6 }
 0xd18   : > { %3363 = vmatmul.mubr.msk.f32.vlgmr.msra.gmra.mxu1 %vm601_vm0, %v4304_v7 }
 0xd19   : > { %3367 = vmatprep.mubr.msk.f32.mxu1 %vm3788_vm1, %v3787_v8 }
 0xdd8   : > { %v1834_v10 = vpop.f32.mrf.mxu1 }
 0xdd9   : > { %v4313_v11 = vadd.f32 %v3129_v9, %v1834_v10 }
 0xdda   : > { %v3364_v12 = vpop.f32.mrf.mxu1 }
 0xddb   : > { %2007 = vrot.lane.b32.xlu1 %v4313_v11, %s3791_s16  ;;  %1839 = vrot.lane.b32.xlu0 %v4313_v11, %s3790_s30  ;;  %s4613_s30 = smov 40   ;;  %s4614_s16 = smov 56  }
 0xddf   : > { %2005 = vrot.lane.b32.xlu1 %v4313_v11, %s3793_s3  ;;  %2177 = vrot.lane.b32.xlu0 %v4313_v11, %s3794_s29  ;;  %s594_s3 = scalar_lea.vmem [#allocation11], %s4046_s14 }
 0xde0   : > { %s2981_s29 = sshll.u32 %s594_s3, 4  ;;  %s2982_s29 = int_to_ptr.vmem [resolvable:$true] %s2981_s29 }
 0xde3   : > { %2179 = vrot.lane.b32.xlu1 %v4313_v11, %s3792_s19  ;;  %2349 = vrot.lane.b32.xlu0 %v4313_v11, %s3796_s18  ;;  %s3177_s19 = sshll.u32 %s3911_s25, 4  ;;  %s3804_s25 = smov [#allocation11]  }
 0xde4   : > { %s4501_s28 = scalar_lea.hbm %s4620_s17, %s3177_s19 }
 0xde7   : > { %2351 = vrot.lane.b32.xlu1 %v4313_v11, %s3795_s27  ;;  %s4618_s27 = scalar_lea.vmem [#allocation6], %s4046_s14 }
 0xe4d   : > { %v2008_v13 = vpop.permute.xlu1 %2007  ;;  %v1840_v14 = vpop.permute.xlu0 %1839 }
 0xe4e   : > { %3366 = vmatpush3.xpose.msk.msra.mxu1 %vm717_vm2, %v1840_v14  ;;  %3376 = vmatpush3.xpose.msk.msra.mxu0 %vm717_vm2, %v2008_v13 }
 0xe4f   : > { %3385 = vmatprep.subr.mxu0 %v3787_v8  ;;  %3370 = vmatprep.subr.mxu1 %v3787_v8 }
 0xe51   : > { %v2006_v15 = vpop.permute.xlu1 %2005  ;;  %3368 = vmatmul.mubr.msk.f32.vlgmr.msra.gmra.mxu1 %vm717_vm2, %v4313_v11  ;;  %v2178_v17 = vpop.permute.xlu0 %2177 }
 0xe52   : > { %3378 = vmatmul.mubr.msk.f32.vlgmr.msra.gmra.mxu0 %vm717_vm2, %v2006_v15  ;;  %3372 = vmatprep.mubr.msk.f32.mxu1 %vm3788_vm1, %v3787_v8  ;;  %v3146_v15 = vld [vmem:[%s4544_s6 + $0x38] sm:$0xff] }
 0xe53   : > { %3387 = vmatprep.mubr.msk.f32.mxu0 %vm3788_vm1, %v3787_v8 }
 0xe55   : > { %v2180_v16 = vpop.permute.xlu1 %2179  ;;  %v2350_v19 = vpop.permute.xlu0 %2349 }
 0xe56   : > { %3386 = vmatpush3.xpose.msk.msra.mxu0 %vm717_vm2, %v2180_v16  ;;  %v3145_v16 = vld [vmem:[%s4544_s6 + $0x30] sm:$0xff] }
 0xe57   : > { %3395 = vmatprep.subr.mxu0 %v3787_v8 }
 0xe59   : > { %v2352_v18 = vpop.permute.xlu1 %2351  ;;  %3388 = vmatmul.mubr.msk.f32.vlgmr.msra.gmra.mxu0 %vm717_vm2, %v2178_v17 }
 0xe5a   : > { %3396 = vmatpush3.xpose.msk.msra.mxu0 %vm717_vm2, %v2352_v18  ;;  %3397 = vmatprep.mubr.msk.f32.mxu0 %vm3788_vm1, %v3787_v8  ;;  %v3144_v18 = vld [vmem:[%s4544_s6 + $0x28] sm:$0xff] }
 0xe5b   : > { %3405 = vmatprep.subr.mxu0 %v3787_v8 }
 0xe5d   : > { %3398 = vmatmul.mubr.msk.f32.vlgmr.msra.gmra.mxu0 %vm717_vm2, %v2350_v19 }
 0xe5e   : > { %3413 = vmatprep.mubr.msk.f32.mxu0 %vm3788_vm1, %v3787_v8  ;;  %3406 = vmatpush3.msra.mxu0 %v3146_v15 }
 0xe5f   : > { %3407 = vmatprep.subr.mxu0 %v3787_v8 }
 0xe60   : > { %3408 = vmatpush3.msra.mxu0 %v3145_v16 }
 0xe61   : > { %3409 = vmatprep.subr.mxu0 %v3787_v8 }
 0xe62   : > { %3410 = vmatpush3.msra.mxu0 %v3144_v18 }
 0xe63   : > { %3411 = vmatprep.subr.mxu0 %v3787_v8 }
 0xf11   : > { %v1911_v21 = vpop.f32.mrf.mxu1 }
 0xf12   : > { %v1915_v22 = vmul.f32 0.35355338, %v1911_v21  ;;  %v2079_v24 = vpop.f32.mrf.mxu0  ;;  %v3143_v21 = vld [vmem:[%s4544_s6 + $0x20] sm:$0xff] }
 0xf13   : > { %v2083_v25 = vmul.f32 0.35355338, %v2079_v24  ;;  %v3369_v26 = vpop.f32.mrf.mxu1  ;;  %3412 = vmatpush3.msra.mxu0 %v3143_v21 }
 0xf14   : > { %v3379_v27 = vpop.f32.mrf.mxu0  ;;  %v1916_v28 = vadd.f32 %v1915_v22, %v4118_v33  ;;  %3427 = vmatprep.subr.mxu0 %v3787_v8 }
 0xf15   : > { %v2084_v29 = vadd.f32 %v2083_v25, %v4118_v33 }
 0xf16   : > { %v1917_v30 = vsel %vm717_vm2, %v1916_v28, -inf }
 0xf17   : > { %1918 = vmax.xlane.f32.xlu1 %v1917_v30  ;;  %v2085_v31 = vsel %vm717_vm2, %v2084_v29, -inf }
 0xf18   : > { %2086 = vmax.xlane.f32.xlu0 %v2085_v31 }
 0xf19   : > { %v2251_v23 = vpop.f32.mrf.mxu0 }
 0xf1a   : > { %v2255_v32 = vmul.f32 0.35355338, %v2251_v23  ;;  %v3148_v23 = vld [vmem:[%s4545_s7 + $0x1] ss:$0 sm:$0xff] }
 0xf1b   : > { %v3389_v34 = vpop.f32.mrf.mxu0 }
 0xf1c   : > { %v2256_v35 = vadd.f32 %v2255_v32, %v4118_v33 }
 0xf1d   : > { %v2423_v36 = vpop.f32.mrf.mxu0 }
 0xf1e   : > { %v2427_v37 = vmul.f32 0.35355338, %v2423_v36  ;;  %v2257_v38 = vsel %vm717_vm2, %v2256_v35, -inf }
 0xf1f   : > { %2258 = vmax.xlane.f32.xlu0 %v2257_v38  ;;  %v3399_v39 = vpop.f32.mrf.mxu0 }
 0xf20   : > { %v2428_v40 = vadd.f32 %v2427_v37, %v4118_v33 }
 0xf22   : > { %v2429_v41 = vsel %vm717_vm2, %v2428_v40, -inf }
 0xf23   : > { %2430 = vmax.xlane.f32.xlu0 %v2429_v41 }
 0xf28   : > { %1928 = vrot.lane.b32.xlu1 %v4313_v11, %s3789_s13  ;;  %s4612_s13 = smov 48  }
 0xfa0   : > { %v1919_v42 = vpop.xlane.xlu1 %1918 }
 0xfa1   : > { %v1920_v43 = vsub.f32 %v1916_v28, %v1919_v42  ;;  %v2087_v44 = vpop.xlane.xlu0 %2086 }
 0xfa2   : > { %v2088_v45 = vsub.f32 %v2084_v29, %v2087_v44  ;;  %v3156_v44 = vld [vmem:[%s4548_s10 + $0x30] sm:$0xff] }
 0xfa3   : > { %v1921_v46 = vmul.f32 1.442695, %v1920_v43  ;;  %v3157_v43 = vld [vmem:[%s4548_s10 + $0x38] sm:$0xff] }
 0xfa4   : > { %v2089_v47 = vmul.f32 1.442695, %v2088_v45  ;;  %v1929_v48 = vpop.permute.xlu1 %1928  ;;  %v3154_v45 = vld [vmem:[%s4548_s10 + $0x20] sm:$0xff] }
 0xfa5   : > { %3570 = vpow2.f32 %v1921_v46  ;;  %3371 = vmatpush3.msra.mxu1 %v1929_v48 }
 0xfa6   : > { %3572 = vpow2.f32 %v2089_v47  ;;  %3380 = vmatprep.subr.mxu1 %v3787_v8 }
 0xfa8   : > { %v2259_v49 = vpop.xlane.xlu0 %2258 }
 0xfa9   : > { %v2260_v33 = vsub.f32 %v2256_v35, %v2259_v49 }
 0xfab   : > { %v2261_v50 = vmul.f32 1.442695, %v2260_v33  ;;  %v3152_v33 = vld [vmem:[%s4546_s8 + $0x1] ss:$0 sm:$0xff] }
 0xfac   : > { %v2431_v51 = vpop.xlane.xlu0 %2430 }
 0xfad   : > { %3574 = vpow2.f32 %v2261_v50  ;;  %v2432_v52 = vsub.f32 %v2428_v40, %v2431_v51  ;;  %v3153_v51 = vld [vmem:[%s4547_s9 + $0x1] ss:$0 sm:$0xff] }
 0xfaf   : > { %v2433_v53 = vmul.f32 1.442695, %v2432_v52 }
 0xfb1   : > { %3576 = vpow2.f32 %v2433_v53 }
 0xfb2   : > { %v3571_v54 = vpop.eup %3570 }
 0xfb3   : > { %v3573_v55 = vpop.eup %3572  ;;  %v1923_v56 = vsel %vm717_vm2, %v3571_v54, 0.0 }
 0xfb4   : > { %1924 = vadd.xlane.f32.xlu1 %v1923_v56  ;;  %v2091_v57 = vsel %vm717_vm2, %v3573_v55, 0.0  ;;  %v3166_v56 = vld [vmem:[%s4550_s12 + $0x68] sm:$0xff] }
 0xfb5   : > { %2092 = vadd.xlane.f32.xlu0 %v2091_v57  ;;  %v3165_v57 = vld [vmem:[%s4550_s12 + $0x60] sm:$0xff] }
 0xfba   : > { %v3575_v58 = vpop.eup %3574 }
 0xfbb   : > { %v2263_v59 = vsel %vm717_vm2, %v3575_v58, 0.0 }
 0xfbc   : > { %2264 = vadd.xlane.f32.xlu1 %v2263_v59  ;;  %v3163_v59 = vld [vmem:[%s4550_s12 + $0x50] sm:$0xff] }
 0xfbe   : > { %v3577_v60 = vpop.eup %3576 }
 0xfbf   : > { %v2435_v61 = vsel %vm717_vm2, %v3577_v60, 0.0 }
 0xfc0   : > { %2436 = vadd.xlane.f32.xlu0 %v2435_v61  ;;  %v3161_v61 = vld [vmem:[%s4550_s12 + $0x40] sm:$0xff] }
 0xfcd   : > { %2268 = vrot.lane.b32.xlu1 %v4313_v11, %s4612_s13 }
 0xfd1   : > { %2440 = vrot.lane.b32.xlu1 %v4313_v11, %s4613_s30  ;;  %s4619_s30 = sld [smem:[#allocation22_spill]] }
 0xfd6   : > { %2096 = vrot.lane.b32.xlu0 %v4313_v11, %s4614_s16 }
 0xfd7   : > { %p4621_p9 = scmp.ne.s32.totalorder %s4619_s30, 0 }
0x103d   : > { %v1925_v62 = vpop.xlane.xlu1 %1924 }
0x103e   : > { %3578 = vrcp.f32 %v1925_v62  ;;  %v2093_v20 = vpop.xlane.xlu0 %2092  ;;  %v3159_v62 = vld [vmem:[%s4549_s11 + $0x1] ss:$0 sm:$0xff] }
0x103f   : > { %3580 = vrcp.f32 %v2093_v20 }
0x1045   : > { %v2265_v63 = vpop.xlane.xlu1 %2264 }
0x1046   : > { %3582 = vrcp.f32 %v2265_v63 }
0x1049   : > { %v2437_v0 = vpop.xlane.xlu0 %2436  ;;  %v2269_v5 = vpop.permute.xlu1 %2268 }
0x104a   : > { %3584 = vrcp.f32 %v2437_v0 }
0x104b   : > { %v3579_v1 = vpop.eup %3578 }
0x104c   : > { %v1927_v2 = vmul.f32 %v3579_v1, %v3571_v54  ;;  %v3581_v3 = vpop.eup %3580  ;;  %v3168_v54 = vld [vmem:[%s4550_s12 + $0x78] sm:$0xff] }
0x104d   : > { %v2097_v4 = vpop.permute.xlu0 %2096  ;;  %v2095_v6 = vmul.f32 %v3581_v3, %v3573_v55  ;;  %v2441_v11 = vpop.permute.xlu1 %2440  ;;  %v3167_v55 = vld [vmem:[%s4550_s12 + $0x70] sm:$0xff] }
0x104e   : > { %3373 = vmatmul.mubr.msk.f32.vlgmr.msra.gmra.mxu1 %vm717_vm2, %v1927_v2 }
0x104f   : > { %3381 = vmatpush3.msra.mxu1 %v2097_v4  ;;  %3382 = vmatprep.mubr.msk.f32.mxu1 %vm3788_vm1, %v3787_v8 }
0x1050   : > { %3390 = vmatprep.subr.mxu1 %v3787_v8 }
0x1052   : > { %3383 = vmatmul.mubr.msk.f32.vlgmr.msra.gmra.mxu1 %vm717_vm2, %v2095_v6 }
0x1053   : > { %v3583_v9 = vpop.eup %3582  ;;  %3391 = vmatpush3.msra.mxu1 %v2269_v5  ;;  %3392 = vmatprep.mubr.msk.f32.mxu1 %vm3788_vm1, %v3787_v8 }
0x1054   : > { %3400 = vmatprep.subr.mxu1 %v3787_v8  ;;  %v2267_v10 = vmul.f32 %v3583_v9, %v3575_v58  ;;  %v3164_v58 = vld [vmem:[%s4550_s12 + $0x58] sm:$0xff] }
0x1056   : > { %3393 = vmatmul.mubr.msk.f32.vlgmr.msra.gmra.mxu1 %vm717_vm2, %v2267_v10 }
0x1057   : > { %v3585_v12 = vpop.eup %3584  ;;  %3401 = vmatpush3.msra.mxu1 %v2441_v11  ;;  %3402 = vmatprep.mubr.msk.f32.mxu1 %vm3788_vm1, %v3787_v8 }
0x1058   : > { %v2439_v13 = vmul.f32 %v3585_v12, %v3577_v60  ;;  %3416 = vmatprep.subr.mxu1 %v3787_v8  ;;  %v3162_v60 = vld [vmem:[%s4550_s12 + $0x48] sm:$0xff] }
0x105a   : > { %3403 = vmatmul.mubr.msk.f32.vlgmr.msra.gmra.mxu1 %vm717_vm2, %v2439_v13 }
0x105b   : > { %3424 = vmatprep.mubr.msk.f32.mxu1 %vm3788_vm1, %v3787_v8  ;;  %3417 = vmatpush3.msra.mxu1 %v3157_v43 }
0x105c   : > { %3418 = vmatprep.subr.mxu1 %v3787_v8 }
0x105d   : > { %3419 = vmatpush3.msra.mxu1 %v3156_v44 }
0x105e   : > { %3420 = vmatprep.subr.mxu1 %v3787_v8 }
0x110e   : > { %v2000_v14 = vpop.f32.mrf.mxu1 }
0x110f   : > { %2004 = vst.msk [vmem:[#allocation2] sm:$0xff] %vm717_vm2, %v2000_v14 }
0x1110   : > { %v3374_v17 = vpop.f32.mrf.mxu1 }
0x1112   : > { %v2168_v19 = vpop.f32.mrf.mxu1 }
0x1113   : > { %2173 = vrot.lane.b32.xlu1 %v2168_v19, %s4615_s26 }
0x1114   : > { %v3384_v22 = vpop.f32.mrf.mxu1 }
0x1116   : > { %v2340_v24 = vpop.f32.mrf.mxu1 }
0x1117   : > { %2345 = vrot.lane.b32.xlu0 %v2340_v24, %s4616_s21  ;;  %s3803_s21 = smov 1e-09  }
0x1118   : > { %v3394_v25 = vpop.f32.mrf.mxu1 }
0x111a   : > { %v2512_v26 = vpop.f32.mrf.mxu1 }
0x111b   : > { %2517 = vrot.lane.b32.xlu1 %v2512_v26, %s4617_s2 }
0x111c   : > { %v3404_v27 = vpop.f32.mrf.mxu1 }
0x1185   : > { %v2174_v28 = vpop.permute.xlu1 %2173 }
0x1186   : > { %2176 = vst.msk [vmem:[#allocation2] sm:$0xff] %vm1059_vm3, %v2174_v28 }
0x1189   : > { %v2346_v29 = vpop.permute.xlu0 %2345 }
0x118a   : > { %2348 = vst.msk [vmem:[#allocation2] sm:$0xff] %vm1232_vm4, %v2346_v29  ;;  %v3170_v29 = vld [vmem:[%s4609_s0 + $0x1] ss:$0 sm:$0xff] }
0x118d   : > { %v2518_v30 = vpop.permute.xlu1 %2517 }
0x118e   : > { %2520 = vst.msk [vmem:[#allocation2] sm:$0xff] %vm1405_vm5, %v2518_v30 }
0x1195   : > { %v2521_v31 = vld [vmem:[#allocation2] sm:$0xff] }
0x1196   : > { %3414 = vmatmul.mubr.msk.f32.vlgmr.msra.gmra.mxu0 %vm601_vm0, %v2521_v31 }
0x1197   : > { %3443 = vmatprep.mubr.msk.f32.mxu0 %vm3788_vm1, %v3787_v8  ;;  %3428 = vmatpush3.msra.mxu0 %v3168_v54 }
0x1198   : > { %3429 = vmatprep.subr.mxu0 %v3787_v8 }
0x1199   : > { %3430 = vmatpush3.msra.mxu0 %v3167_v55 }
0x119a   : > { %3431 = vmatprep.subr.mxu0 %v3787_v8 }
0x119b   : > { %3432 = vmatpush3.msra.mxu0 %v3166_v56 }
0x119c   : > { %3433 = vmatprep.subr.mxu0 %v3787_v8 }
0x119d   : > { %3434 = vmatpush3.msra.mxu0 %v3165_v57 }
0x119e   : > { %3435 = vmatprep.subr.mxu0 %v3787_v8 }
0x119f   : > { %3436 = vmatpush3.msra.mxu0 %v3164_v58 }
0x11a0   : > { %3437 = vmatprep.subr.mxu0 %v3787_v8 }
0x11a1   : > { %3438 = vmatpush3.msra.mxu0 %v3163_v59 }
0x11a2   : > { %3439 = vmatprep.subr.mxu0 %v3787_v8 }
0x11a3   : > { %3440 = vmatpush3.msra.mxu0 %v3162_v60 }
0x11a4   : > { %3441 = vmatprep.subr.mxu0 %v3787_v8 }
0x11a5   : > { %3442 = vmatpush3.msra.mxu0 %v3161_v61 }
0x1256   : > { %v2604_v32 = vpop.f32.mrf.mxu0 }
0x1257   : > { %v2605_v34 = vadd.f32 %v3148_v23, %v2604_v32 }
0x1258   : > { %v3415_v35 = vpop.f32.mrf.mxu0 }
0x1259   : > { %v2608_v36 = vadd.f32 %v2605_v34, %v4304_v7  ;;  %v3155_v7 = vld [vmem:[%s4548_s10 + $0x28] sm:$0xff] }
0x125a   : > { %3421 = vmatpush3.msra.mxu1 %v3155_v7 }
0x125b   : > { %v2613_v37 = vsel %vm601_vm0, %v2608_v36, 0.0  ;;  %3422 = vmatprep.subr.mxu1 %v3787_v8 }
0x125c   : > { %2614 = vadd.xlane.f32.xlu0 %v2613_v37  ;;  %3423 = vmatpush3.msra.mxu1 %v3154_v45 }
0x125d   : > { %3446 = vmatprep.subr.mxu1 %v3787_v8 }
0x12e5   : > { %v2615_v38 = vpop.xlane.xlu0 %2614 }
0x12e6   : > { %v2616_v39 = vmul.f32 0.03125, %v2615_v38 }
0x12e8   : > { %v2617_v40 = vsub.f32 %v2608_v36, %v2616_v39 }
0x12ea   : > { %v2618_v41 = vmul.f32 %v2617_v40, %v2617_v40 }
0x12ec   : > { %v2619_v42 = vsel %vm601_vm0, %v2618_v41, 0.0 }
0x12ed   : > { %2620 = vadd.xlane.f32.xlu1 %v2619_v42 }
0x1376   : > { %v2621_v46 = vpop.xlane.xlu1 %2620 }
0x1377   : > { %v2622_v47 = vmul.f32 0.03125, %v2621_v46 }
0x1379   : > { %v2623_v48 = vadd.f32 1e-12, %v2622_v47 }
0x137b   : > { %3586 = vrsqrt.f32 %v2623_v48 }
0x1388   : > { %v3587_v49 = vpop.eup %3586 }
0x1389   : > { %v2625_v50 = vmul.f32 %v3587_v49, %v2617_v40  ;;  %v3596_v40 = vld [vmem:[%s4618_s27] sm:$0x1] }
0x138a   : > { %v2949_v41 = vsel %vm2948_vm9, %v3596_v40, 0.0 }
0x138b   : > { %v2632_v52 = vmul.f32 %v3152_v33, %v2625_v50 }
0x138d   : > { %v4440_v53 = vadd.f32 %v3153_v51, %v2632_v52  ;;  %v3174_v51 = vld [vmem:[%s4610_s20 + $0x1] ss:$0 sm:$0xff] }
0x138f   : > { %3425 = vmatmul.mubr.msk.f32.vlgmr.msra.gmra.mxu1 %vm601_vm0, %v4440_v53 }
0x1390   : > { %3448 = vmatprep.mubr.msk.f32.mxu1 %vm3788_vm1, %v3787_v8 }
0x144f   : > { %v2722_v20 = vpop.f32.mrf.mxu1 }
0x1450   : > { %v2723_v63 = vadd.f32 %v3159_v62, %v2722_v20 }
0x1451   : > { %v3426_v0 = vpop.f32.mrf.mxu1 }
0x1452   : > { %v2727_v1 = vmul.f32 0.70710677, %v2723_v63  ;;  %v2726_v26 = vmul.f32 0.5, %v2723_v63 }
0x1454   : > { %v2728_v2 = vand.u32 2147483647, %v2727_v1  ;;  %vm2748_vm8 = vcmp.ge.f32.partialorder %v2727_v1, 0.0 }
0x1456   : > { %v2729_v3 = vmul.f32 0.3275911, %v2728_v2  ;;  %v2742_v5 = vsub.f32 0.0, %v2728_v2 }
0x1458   : > { %v2730_v4 = vadd.f32 1.0, %v2729_v3  ;;  %v2743_v6 = vmul.f32 %v2742_v5, %v2728_v2 }
0x145a   : > { %3588 = vrcp.f32 %v2730_v4  ;;  %v2744_v11 = vmul.f32 1.442695, %v2743_v6 }
0x145c   : > { %3590 = vpow2.f32 %v2744_v11 }
0x1467   : > { %v3589_v9 = vpop.eup %3588 }
0x1468   : > { %v2733_v10 = vmul.f32 1.0614054, %v3589_v9 }
0x1469   : > { %v3591_v19 = vpop.eup %3590 }
0x146a   : > { %v2734_v12 = vadd.f32 -1.4531521, %v2733_v10 }
0x146c   : > { %v2735_v8 = vmul.f32 %v3589_v9, %v2734_v12 }
0x146e   : > { %v2736_v13 = vadd.f32 1.4214138, %v2735_v8 }
0x1470   : > { %v2737_v14 = vmul.f32 %v3589_v9, %v2736_v13 }
0x1472   : > { %v2738_v15 = vadd.f32 -0.28449672, %v2737_v14 }
0x1474   : > { %v2739_v16 = vmul.f32 %v3589_v9, %v2738_v15 }
0x1476   : > { %v2740_v17 = vadd.f32 0.2548296, %v2739_v16 }
0x1478   : > { %v2741_v18 = vmul.f32 %v3589_v9, %v2740_v17 }
0x147a   : > { %v2746_v21 = vmul.f32 %v3591_v19, %v2741_v18 }
0x147c   : > { %v2747_v22 = vsub.f32 1.0, %v2746_v21 }
0x147e   : > { %v2749_v24 = vsub.f32 0.0, %v2747_v22 }
0x1480   : > { %v2750_v25 = vsel %vm2748_vm8, %v2747_v22, %v2749_v24 }
0x1481   : > { %v2751_v27 = vadd.f32 1.0, %v2750_v25 }
0x1483   : > { %v2752_v28 = vmul.f32 %v2751_v27, %v2726_v26 }
0x1485   : > { %3444 = vmatmul.mubr.msk.f32.vlgmr.msra.gmra.mxu0 %vm1648_vm7, %v2752_v28 }
0x1545   : > { %v2839_v30 = vpop.f32.mrf.mxu0 }
0x1546   : > { %v2840_v31 = vadd.f32 %v3170_v29, %v2839_v30 }
0x1547   : > { %v3445_v23 = vpop.f32.mrf.mxu0 }
0x1548   : > { %v2843_v32 = vadd.f32 %v2840_v31, %v4440_v53  ;;  %v3175_v53 = vld [vmem:[%s4611_s15 + $0x1] ss:$0 sm:$0xff] }
0x154a   : > { %v2848_v34 = vsel %vm601_vm0, %v2843_v32, 0.0 }
0x154b   : > { %2849 = vadd.xlane.f32.xlu0 %v2848_v34 }
0x15d4   : > { %v2850_v35 = vpop.xlane.xlu0 %2849 }
0x15d5   : > { %v2851_v36 = vmul.f32 0.03125, %v2850_v35 }
0x15d7   : > { %v2852_v37 = vsub.f32 %v2843_v32, %v2851_v36 }
0x15d9   : > { %v2853_v38 = vmul.f32 %v2852_v37, %v2852_v37 }
0x15db   : > { %v2854_v39 = vsel %vm601_vm0, %v2853_v38, 0.0 }
0x15dc   : > { %2855 = vadd.xlane.f32.xlu0 %v2854_v39 }
0x15e0   : > { %2950 = vadd.xlane.f32.xlu0 %v2949_v41 }
0x1665   : > { %v2856_v42 = vpop.xlane.xlu0 %2855 }
0x1666   : > { %v2857_v43 = vmul.f32 0.03125, %v2856_v42 }
0x1668   : > { %v2858_v44 = vadd.f32 1e-12, %v2857_v43 }
0x1669   : > { %v2951_v7 = vpop.xlane.xlu0 %2950 }
0x166a   : > { %3592 = vrsqrt.f32 %v2858_v44  ;;  %v2952_v45 = vrot.slane %v2951_v7, 4 }
0x166c   : > { %v2953_v46 = vadd.f32 %v2952_v45, %v2951_v7 }
0x166e   : > { %v2954_v47 = vrot.slane %v2953_v46, 2 }
0x1670   : > { %v2955_v48 = vadd.f32 %v2954_v47, %v2953_v46 }
0x1672   : > { %v2956_v49 = vrot.slane %v2955_v48, 1 }
0x1674   : > { %v2957_v33 = vadd.f32 %v2956_v49, %v2955_v48 }
0x1676   : > { %3451 = vpush %v2957_v33 }
0x1677   : > { %v3593_v50 = vpop.eup %3592 }
0x1678   : > { %v2860_v52 = vmul.f32 %v3593_v50, %v2852_v37 }
0x167a   : > { %v2867_v54 = vmul.f32 %v3174_v51, %v2860_v52 }
0x167c   : > { %v2874_v55 = vadd.f32 %v3175_v53, %v2867_v54 }
0x167e   : > { %3447 = vmatpush3.msra.mxu1 %v2874_v55 }
0x167f   : > { %3449 = vmatmul.mubr.msk.f32.vlgmr.msra.gmra.mxu1 %vm717_vm2, %v3596_v40 }
0x16a7   : > { %s3452_s26 = spop %3451 }
0x16a8   : > { %s2959_s2 = smax.f32 %s3803_s21, %s3452_s26  ;;  %s3705_s26 = scalar_lea.vmem %s2982_s29, 16 }
0x16a9   : > { %s2960_s13 = smul.f32 8.0, %s2959_s2  ;;  %p3706_p6 = scmp.ne.s32.totalorder %s2982_s29, %s3705_s26 }
0x16aa   : > { %s3709_s21 = sshll.u32 %s3804_s25, 4  ;;  %s3710_s21 = int_to_ptr.vmem [resolvable:$false] %s3709_s21 }
0x16ab   : > { %v2961_v56 = vstv %s2960_s13  ;;  %p3707_p3 = pnand %p3706_p6, %p4621_p9  ;;  %s3711_s2 = scalar_lea.vmem %s3710_s21, 32 }
0x16ac   : > { %3594 = vrcp.f32 %v2961_v56  ;;  %p3712_p13 = scmp.lt.s32.totalorder %s2982_s29, %s3710_s21  ;;  %p3713_p5 = scmp.lt.s32.totalorder %s3711_s2, %s3705_s26 }
0x16ad   : > { %p3708_p7 = pneg %p3707_p3 }
0x16ae   : > { %p3714_p12 = por %p3713_p5, %p3712_p13 }
0x16b0   : > { %p3715_p0 = pnand %p3714_p12, %p3708_p7 }
0x16b9   : > { %v3595_v57 = vpop.eup %3594 }
0x16ba   : > { %3453 = vpush %v3595_v57 }
0x16eb   : > { %s3454_s16 = spop %3453 }
0x16ec   : > { %v2964_v58 = vstv %s3454_s16 }
0x173f   : > { %v2944_v59 = vpop.f32.mrf.mxu1 }
0x1740   : > { %v2965_v60 = vmul.f32 %v2964_v58, %v2944_v59 }
0x1741   : > { %v3450_v61 = vpop.f32.mrf.mxu1 }
0x1742   : > { %2967 = vst.msk [vmem:[%s594_s3] sm:$0x1] %vm2966_vm10, %v2965_v60 }
0x1743   : > { %3718 = shalt.err (!%p3715_p0)
}
0x1744   : > { %s3719_s13 = scalar_lea.hbm %s4501_s28, 16  ;;  %s3723_s19 = scalar_lea.hbm %s4620_s17, 32 }
0x1745   : > { %p3720_p1 = scmp.ne.s32.totalorder %s4501_s28, %s3719_s13  ;;  %p3724_p11 = scmp.lt.s32.totalorder %s4501_s28, %s4620_s17 }
0x1746   : > { %p3725_p2 = scmp.lt.s32.totalorder %s3723_s19, %s3719_s13 }
0x1747   : > { %p3721_p10 = pnand %p3720_p1, %p4621_p9 }
0x1748   : > { %p3726_p4 = por %p3725_p2, %p3724_p11 }
0x1749   : > { %p3722_p8 = pneg %p3721_p10 }
0x174b   : > { %p3727_p6 = pnand %p3726_p4, %p3722_p8 }
0x174d   : > { %3730 = shalt.err (!%p3727_p6)
}
0x174e   : > { %3467 = dma.vmem_to_hbm [thread:$0]  (%p4621_p9), %s2982_s29, 16, %s4501_s28, %s2969_s23  }
0x174f PF: > { %s4622_s18 = sld [smem:[#allocation17_spill]]  ;;  %p4625_p7 = scmp.ge.s32.totalorder %s3781_s24, 2 }
0x1750   : > { %s4623_s26 = sld [smem:[#allocation19_spill]] }
0x1755   : > { %s2993_s25 = sand.u32 1, %s4622_s18  }
0x1756   : > { %p4624_p3 = scmp.ne.s32.totalorder %s4623_s26, 0  ;;  %s2994_s21 = scalar_lea.sflag [#allocation5], %s2993_s25 }
0x1758   : > { %p3484_p13 = pnand %p4625_p7, %p4624_p3 }
0x175a   : > { %p3485_p5 = pneg %p3484_p13 }
0x175c   : > { %3764 = dma.done.wait (%p3485_p5), %s2994_s21, 16  }
0x175d   : > { %3766 = vsyncadd (%p3485_p5), %s2994_s21, 4294967280  ;;  %s4626_s24 = sld [smem:[#allocation20_spill]]  ;;  %s4629_s21 = smov %s3773_s22 }
0x175e   : > { %s4627_s2 = sld [smem:[#allocation18_spill]] }
0x175f   : > { %s4628_s23 = sld [smem:[#allocation21_spill]] }
0x1763   : > { %p33_p12 = scmp.ge.s32.totalorder %s4626_s24, 4  }
0x1764   : > { %s4630_s22 = smov %s4627_s2 }
0x1765   :  { %35 = sbr.rel (!%p33_p12) target bundleno = 16 (0x10), region = 162 }
0x176a   :  { %2998 = vsyncpa [#allocation4], 1 }
0x176b   :  { %3000 = vsyncpa [#allocation4 + $0x1], 1 }
0x176c   :  { %3001 = vsyncpa [#allocation7], 1 }
0x176d   :  { %3003 = vsyncpa [#allocation7 + $0x1], 1 }
0x176e   :  { %3004 = vsyncpa [#allocation10], 1 }
0x176f   :  { %3005 = vsyncpa [#allocation5], 1 }
0x1770   :  { %3007 = vsyncpa [#allocation5 + $0x1], 1 }

</bundles_post_ra>
